<compile_context>
chip_gen: v5e
topology: v5e:2x2
jax: 0.10.0
libtpu: 0.0.40
codegen_flags: <defaults>
</compile_context>

<pallas_src>
import functools

import jax
import jax.numpy as jnp
from jax import lax
from jax.experimental import pallas as pl
from jax.experimental.pallas import tpu as pltpu

K = 5     # conv kernel size
PAD = 2   # "same" padding


def _round_up(v, m):
    return (v + m - 1) // m * m


# ----------------------------------------------------------------------------
# Fused Pallas kernel: the whole 8-layer autoencoder in one invocation.
#   alpha_ref : SMEM (n_layers-1,)        PReLU slopes (one shared scalar per layer)
#   mask_ref  : VMEM (1, W)               1.0 on real (batch, time) lanes, 0 on padding
#   x_ref     : VMEM (C0_pad, W)          batch folded into lanes, channel rows padded to 8
#   refs      : n_layers weight refs (Cout_pad_i, 8 + K*Cin_pad_i) [bias in column 0],
#               then o_ref (C_last_pad, W),
#               then scratch lhs_scr (8 + K*C_pad_max, W)  [im2col LHS]
# ----------------------------------------------------------------------------
def cae_fused_kernel(alpha_ref, mask_ref, x_ref, *refs, n_layers):
    w_refs = refs[:n_layers]
    o_ref = refs[n_layers]
    lhs_scr = refs[n_layers + 1]

    W = x_ref.shape[1]

    # Bias block: row 0 = ones (weights carry the bias as their column 0), rows 1..7 = 0.
    row_id = lax.broadcasted_iota(jnp.int32, (8, W), 0)
    lhs_scr[0:8, :] = jnp.where(row_id == 0, 1.0, 0.0).astype(jnp.float32)

    mask = mask_ref[...]                       # (1, W)
    x = x_ref[...]                             # (c0_pad, W); padding lanes/rows are zero

    for i in range(n_layers):                  # unrolled at trace time
        c = x.shape[0]                         # multiple of 8 (channels padded wrapper-side)
        rows = 8 + K * c

        # im2col via lane rotation: tap k needs x[ci, t + k - PAD].  Rotation wraps into
        # lanes that are guaranteed zero (segment gaps / slab tail), which reproduces the
        # "same"-conv zero padding exactly.  Every store offset is a multiple of 8 rows.
        for k in range(K):
            lhs_scr[8 + k * c:8 + (k + 1) * c, :] = pltpu.roll(
                x, shift=(PAD - k) % W, axis=1)

        # One MXU matmul per layer; bias applied via the ones row.
        acc = jnp.dot(w_refs[i][...], lhs_scr[0:rows, :],
                      preferred_element_type=jnp.float32)          # (cout_pad, W)

        if i < n_layers - 1:
            a = alpha_ref[i]                                       # PReLU (shared scalar)
            acc = jnp.where(acc >= 0.0, acc, a * acc)
            acc = acc * mask            # keep segment-gap / tail lanes exactly zero
        x = acc

    o_ref[...] = x                      # (c_last_pad, W): full-width unmasked store


# ----------------------------------------------------------------------------
# Wrapper: pack (N, C, L) into a lane-dense slab, run the fused kernel, unpack.
# ----------------------------------------------------------------------------
def cae_forward_pallas(x_ncl, w_aug, alphas):
    """x_ncl: (N, x_dim, L) float32 (PyTorch NCL layout). Returns (N, x_dim, L)."""
    N, c0, L = x_ncl.shape
    n_layers = len(w_aug)
    c0_pad = (w_aug[0].shape[1] - 8) // K
    c_last_pad = w_aug[-1].shape[0]
    c_pad_max = max((w.shape[1] - 8) // K for w in w_aug)

    # Each batch element occupies a segment of seg_len lanes: L real samples followed by
    # PAD zero lanes, so neighbouring segments never leak into each other's 5-tap window.
    seg_len = L + PAD
    W = _round_up(N * seg_len, 128)            # lane-dense slab width (multiple of 128)

    # Pack: (N, C, L) -> (C_pad, W).  Pure layout plumbing (pad/transpose/reshape) in XLA.
    xt = jnp.transpose(x_ncl.astype(jnp.float32), (1, 0, 2))              # (C, N, L)
    xt = jnp.pad(xt, ((0, c0_pad - c0), (0, 0), (0, seg_len - L)))        # (C_pad, N, seg)
    x_packed = xt.reshape(c0_pad, N * seg_len)
    x_packed = jnp.pad(x_packed, ((0, 0), (0, W - N * seg_len)))          # (C_pad, W)

    lane = jnp.arange(W)
    mask = ((lane < N * seg_len) & ((lane % seg_len) < L)).astype(jnp.float32)[None, :]

    alpha_arr = jnp.asarray(alphas, jnp.float32).reshape(n_layers - 1)

    in_specs = [
        pl.BlockSpec(memory_space=pltpu.MemorySpace.SMEM),      # PReLU slopes
        pl.BlockSpec((1, W), lambda i: (0, 0)),                 # lane validity mask
        pl.BlockSpec((c0_pad, W), lambda i: (0, 0)),            # packed input slab
    ]
    # Weights: constant block index -> DMA'd once, VMEM-resident for the whole pass.
    in_specs += [pl.BlockSpec(w.shape, lambda i: (0, 0)) for w in w_aug]

    kern = functools.partial(cae_fused_kernel, n_layers=n_layers)
    out = pl.pallas_call(
        kern,
        out_shape=jax.ShapeDtypeStruct((c_last_pad, W), jnp.float32),
        grid=(1,),                                              # whole batch in one step
        in_specs=in_specs,
        out_specs=pl.BlockSpec((c_last_pad, W), lambda i: (0, 0)),
        scratch_shapes=[pltpu.VMEM((8 + K * c_pad_max, W), jnp.float32)],
        compiler_params=pltpu.CompilerParams(
            dimension_semantics=("arbitrary",),
            vmem_limit_bytes=32 * 1024 * 1024),
    )(alpha_arr, mask, x_packed, *w_aug)

    # Unpack: (C_last_pad, W) -> (N, x_dim, L).
    y = out[:c0, :N * seg_len].reshape(c0, N, seg_len)[:, :, :L]
    return jnp.transpose(y, (1, 0, 2))


# ----------------------------------------------------------------------------
# Weight conversion: torch layouts -> padded, 8-row-aligned (Cout_pad, 8+K*Cin_pad) mats.
#   column 0            : bias        (columns 1..7 zero -> matches the 8-row ones block)
#   columns 8+k*Cin_pad+ci : w_eq[co, ci, k]   (zero for padded ci / co)
# ----------------------------------------------------------------------------
def conv_weight_to_aug(w_conv, b):
    """Conv1d weight (Cout, Cin, K) + bias -> (Cout_pad8, 8 + K*Cin_pad8)."""
    cout, cin, _ = w_conv.shape
    cout_p, cin_p = _round_up(cout, 8), _round_up(cin, 8)
    aug = jnp.zeros((cout_p, 8 + K * cin_p), jnp.float32)
    aug = aug.at[:cout, 0].set(b)
    for k in range(K):
        aug = aug.at[:cout, 8 + k * cin_p:8 + k * cin_p + cin].set(w_conv[:, :, k])
    return aug


def convT_weight_to_aug(w_t, b):
    """ConvTranspose1d weight (Cin, Cout, K), stride=1: equivalent conv weight is
    w_eq[co, ci, k] = w[ci, co, K-1-k]; then same as Conv1d."""
    w_eq = jnp.transpose(w_t[:, :, ::-1], (1, 0, 2))
    return conv_weight_to_aug(w_eq, b)


# ----------------------------------------------------------------------------
# Parameter construction (deterministic, torch layouts).
# ----------------------------------------------------------------------------
def build_params(key, x_dim, h_dim):
    chans = [x_dim, h_dim * 8, h_dim * 4, h_dim * 2, h_dim,
             h_dim * 2, h_dim * 4, h_dim * 8, x_dim]
    is_transposed = [False, False, False, False, True, True, True, True]

    torch_weights, biases = [], []
    for i in range(8):
        cin, cout = chans[i], chans[i + 1]
        key, wk, bk = jax.random.split(key, 3)
        if is_transposed[i]:
            shape = (cin, cout, K)                 # torch ConvTranspose1d layout
            fan_in, fan_out = cout * K, cin * K
        else:
            shape = (cout, cin, K)                 # torch Conv1d layout
            fan_in, fan_out = cin * K, cout * K
        limit = (6.0 / (fan_in + fan_out)) ** 0.5  # xavier_uniform
        torch_weights.append(jax.random.uniform(wk, shape, jnp.float32, -limit, limit))
        biases.append(jax.random.uniform(bk, (cout,), jnp.float32, -0.05, 0.05))

    alphas = [jnp.float32(0.25)] * 7               # 7 nn.PReLU(), default init 0.25
    return torch_weights, biases, alphas, is_transposed


# ----------------------------------------------------------------------------
# Pure-JAX reference following torch Conv1d / ConvTranspose1d semantics.
# ----------------------------------------------------------------------------
def _ref_conv1d(x, w, b):          # x (N,Cin,L), w (Cout,Cin,K)
    L = x.shape[-1]
    xp = jnp.pad(x, ((0, 0), (0, 0), (PAD, PAD)))
    out = jnp.zeros((x.shape[0], w.shape[0], L), jnp.float32)
    for k in range(K):
        out = out + jnp.einsum('ncl,oc->nol', xp[:, :, k:k + L], w[:, :, k])
    return out + b[None, :, None]


def _ref_convT1d(x, w, b):         # x (N,Cin,L), w (Cin,Cout,K)
    L = x.shape[-1]
    xp = jnp.pad(x, ((0, 0), (0, 0), (PAD, PAD)))
    out = jnp.zeros((x.shape[0], w.shape[1], L), jnp.float32)
    for k in range(K):
        s = (K - 1) - k            # y[co,t] = sum x[ci, t+PAD-k] * w[ci,co,k]
        out = out + jnp.einsum('ncl,co->nol', xp[:, :, s:s + L], w[:, :, k])
    return out + b[None, :, None]


def cae_forward_ref(x_ncl, torch_weights, biases, alphas, is_transposed):
    x = x_ncl.astype(jnp.float32)
    for i in range(len(torch_weights)):
        if is_transposed[i]:
            x = _ref_convT1d(x, torch_weights[i], biases[i])
        else:
            x = _ref_conv1d(x, torch_weights[i], biases[i])
        if i < len(torch_weights) - 1:
            x = jnp.where(x >= 0.0, x, alphas[i] * x)
    return x


# ----------------------------------------------------------------------------
# TODO(synk): the fit() training loop, Adam/StepLR optimizer state, early stopping and
# checkpoint I/O are host-side logic outside the forward pass and are not translated.
# ----------------------------------------------------------------------------
if __name__ == "__main__":
    key = jax.random.PRNGKey(0)
    batch, x_dim, h_dim, seq = 2, 4, 8, 16

    key, pkey, xkey = jax.random.split(key, 3)
    torch_w, biases, alphas, is_tr = build_params(pkey, x_dim, h_dim)

    # Convert every layer once to the fused kernel's padded matmul form.
    w_aug = [convT_weight_to_aug(w, b) if tr else conv_weight_to_aug(w, b)
             for w, b, tr in zip(torch_w, biases, is_tr)]

    x = jax.random.normal(xkey, (batch, x_dim, seq), jnp.float32)   # NCL

    out = cae_forward_pallas(x, w_aug, alphas)
    out = jax.block_until_ready(out)

    ref = cae_forward_ref(x, torch_w, biases, alphas, is_tr)
    assert out.shape == (batch, x_dim, seq)
    assert jnp.allclose(out, ref, atol=1e-4, rtol=1e-4), "mismatch vs reference"

    print("KERNEL_OK")
</pallas_src>

<mosaic_0001>
module attributes {stable_mosaic.version = 11 : i64} {
  func.func @cae_fused_kernel(%arg0: i32, %arg1: memref<7xf32, #tpu.memory_space<smem>>, %arg2: memref<1x128xf32, #tpu.memory_space<vmem>>, %arg3: memref<8x128xf32, #tpu.memory_space<vmem>>, %arg4: memref<64x48xf32, #tpu.memory_space<vmem>>, %arg5: memref<32x328xf32, #tpu.memory_space<vmem>>, %arg6: memref<16x168xf32, #tpu.memory_space<vmem>>, %arg7: memref<8x88xf32, #tpu.memory_space<vmem>>, %arg8: memref<16x48xf32, #tpu.memory_space<vmem>>, %arg9: memref<32x88xf32, #tpu.memory_space<vmem>>, %arg10: memref<64x168xf32, #tpu.memory_space<vmem>>, %arg11: memref<8x328xf32, #tpu.memory_space<vmem>>, %arg12: memref<8x128xf32, #tpu.memory_space<vmem>>, %arg13: memref<328x128xf32, #tpu.memory_space<vmem>>) attributes {dimension_semantics = [#tpu.dimension_semantics<arbitrary>], iteration_bounds = array<i64: 1>, scalar_prefetch = 0 : i64, scratch_operands = 1 : i64, tpu.core_type = #tpu.core_type<tc>, window_params = [{transform_indices = @transform_0, window_bounds = array<i64: 7>}, {pipeline_mode = #tpu.pipeline_mode<synchronous>, transform_indices = @transform_1, window_bounds = array<i64: 1, 128>}, {pipeline_mode = #tpu.pipeline_mode<synchronous>, transform_indices = @transform_2, window_bounds = array<i64: 8, 128>}, {pipeline_mode = #tpu.pipeline_mode<synchronous>, transform_indices = @transform_3, window_bounds = array<i64: 64, 48>}, {pipeline_mode = #tpu.pipeline_mode<synchronous>, transform_indices = @transform_4, window_bounds = array<i64: 32, 328>}, {pipeline_mode = #tpu.pipeline_mode<synchronous>, transform_indices = @transform_5, window_bounds = array<i64: 16, 168>}, {pipeline_mode = #tpu.pipeline_mode<synchronous>, transform_indices = @transform_6, window_bounds = array<i64: 8, 88>}, {pipeline_mode = #tpu.pipeline_mode<synchronous>, transform_indices = @transform_7, window_bounds = array<i64: 16, 48>}, {pipeline_mode = #tpu.pipeline_mode<synchronous>, transform_indices = @transform_8, window_bounds = array<i64: 32, 88>}, {pipeline_mode = #tpu.pipeline_mode<synchronous>, transform_indices = @transform_9, window_bounds = array<i64: 64, 168>}, {pipeline_mode = #tpu.pipeline_mode<synchronous>, transform_indices = @transform_10, window_bounds = array<i64: 8, 328>}, {pipeline_mode = #tpu.pipeline_mode<synchronous>, transform_indices = @transform_11, window_bounds = array<i64: 8, 128>}]} {
    %0 = tpu.iota {dimensions = array<i32: 0>} : vector<8x128xi32>
    %c0_i32 = arith.constant 0 : i32
    %1 = vector.broadcast %c0_i32 : i32 to vector<8x128xi32>
    %2 = arith.cmpi eq, %0, %1 : vector<8x128xi32>
    %cst = arith.constant 1.000000e+00 : f32
    %cst_0 = arith.constant 0.000000e+00 : f32
    %3 = vector.broadcast %cst : f32 to vector<8x128xf32>
    %4 = vector.broadcast %cst_0 : f32 to vector<8x128xf32>
    %5 = arith.select %2, %3, %4 : vector<8x128xi1>, vector<8x128xf32>
    %c0 = arith.constant 0 : index
    %c0_1 = arith.constant 0 : index
    %6 = vector.load %arg13[%c0, %c0_1] : memref<328x128xf32, #tpu.memory_space<vmem>>, vector<8x128xf32>
    tpu.vector_store %arg13[%c0, %c0_1], %5 {strides = array<i32>} : memref<328x128xf32, #tpu.memory_space<vmem>>, vector<8x128xf32>,
    %c0_2 = arith.constant 0 : index
    %c0_3 = arith.constant 0 : index
    %7 = vector.load %arg2[%c0_2, %c0_3] : memref<1x128xf32, #tpu.memory_space<vmem>>, vector<1x128xf32>
    %c0_4 = arith.constant 0 : index
    %c0_5 = arith.constant 0 : index
    %8 = vector.load %arg3[%c0_4, %c0_5] : memref<8x128xf32, #tpu.memory_space<vmem>>, vector<8x128xf32>
    %c2_i32 = arith.constant 2 : i32
    %9 = tpu.dynamic_rotate %8 by %c2_i32 dim 1 : vector<8x128xf32>, i32 -> vector<8x128xf32>
    %c8 = arith.constant 8 : index
    %c0_6 = arith.constant 0 : index
    %10 = vector.load %arg13[%c8, %c0_6] : memref<328x128xf32, #tpu.memory_space<vmem>>, vector<8x128xf32>
    tpu.vector_store %arg13[%c8, %c0_6], %9 {strides = array<i32>} : memref<328x128xf32, #tpu.memory_space<vmem>>, vector<8x128xf32>,
    %c1_i32 = arith.constant 1 : i32
    %11 = tpu.dynamic_rotate %8 by %c1_i32 dim 1 : vector<8x128xf32>, i32 -> vector<8x128xf32>
    %c16 = arith.constant 16 : index
    %c0_7 = arith.constant 0 : index
    %12 = vector.load %arg13[%c16, %c0_7] : memref<328x128xf32, #tpu.memory_space<vmem>>, vector<8x128xf32>
    tpu.vector_store %arg13[%c16, %c0_7], %11 {strides = array<i32>} : memref<328x128xf32, #tpu.memory_space<vmem>>, vector<8x128xf32>,
    %c0_i32_8 = arith.constant 0 : i32
    %13 = tpu.dynamic_rotate %8 by %c0_i32_8 dim 1 : vector<8x128xf32>, i32 -> vector<8x128xf32>
    %c24 = arith.constant 24 : index
    %c0_9 = arith.constant 0 : index
    %14 = vector.load %arg13[%c24, %c0_9] : memref<328x128xf32, #tpu.memory_space<vmem>>, vector<8x128xf32>
    tpu.vector_store %arg13[%c24, %c0_9], %13 {strides = array<i32>} : memref<328x128xf32, #tpu.memory_space<vmem>>, vector<8x128xf32>,
    %c127_i32 = arith.constant 127 : i32
    %15 = tpu.dynamic_rotate %8 by %c127_i32 dim 1 : vector<8x128xf32>, i32 -> vector<8x128xf32>
    %c32 = arith.constant 32 : index
    %c0_10 = arith.constant 0 : index
    %16 = vector.load %arg13[%c32, %c0_10] : memref<328x128xf32, #tpu.memory_space<vmem>>, vector<8x128xf32>
    tpu.vector_store %arg13[%c32, %c0_10], %15 {strides = array<i32>} : memref<328x128xf32, #tpu.memory_space<vmem>>, vector<8x128xf32>,
    %c126_i32 = arith.constant 126 : i32
    %17 = tpu.dynamic_rotate %8 by %c126_i32 dim 1 : vector<8x128xf32>, i32 -> vector<8x128xf32>
    %c40 = arith.constant 40 : index
    %c0_11 = arith.constant 0 : index
    %18 = vector.load %arg13[%c40, %c0_11] : memref<328x128xf32, #tpu.memory_space<vmem>>, vector<8x128xf32>
    tpu.vector_store %arg13[%c40, %c0_11], %17 {strides = array<i32>} : memref<328x128xf32, #tpu.memory_space<vmem>>, vector<8x128xf32>,
    %c0_12 = arith.constant 0 : index
    %c0_13 = arith.constant 0 : index
    %19 = vector.load %arg4[%c0_12, %c0_13] : memref<64x48xf32, #tpu.memory_space<vmem>>, vector<64x48xf32>
    %c0_14 = arith.constant 0 : index
    %c0_15 = arith.constant 0 : index
    %20 = vector.load %arg13[%c0_14, %c0_15] : memref<328x128xf32, #tpu.memory_space<vmem>>, vector<48x128xf32>
    %cst_16 = arith.constant dense<0.000000e+00> : vector<64x128xf32>
    %21 = tpu.matmul %19, %20, %cst_16 {dimension_numbers = #tpu.dot_dimension_numbers<[1], [0], [0], [1], [0, 0, 1, 1], [], []>} : vector<64x48xf32>, vector<48x128xf32>, vector<64x128xf32> -> vector<64x128xf32>
    %c0_17 = arith.constant 0 : index
    %22 = memref.load %arg1[%c0_17] : memref<7xf32, #tpu.memory_space<smem>>
    %cst_18 = arith.constant 0.000000e+00 : f32
    %23 = vector.broadcast %cst_18 : f32 to vector<64x128xf32>
    %24 = arith.cmpf oge, %21, %23 : vector<64x128xf32>
    %25 = vector.broadcast %22 : f32 to vector<64x128xf32>
    %26 = arith.mulf %25, %21 : vector<64x128xf32>
    %27 = arith.select %24, %21, %26 : vector<64x128xi1>, vector<64x128xf32>
    %28 = vector.broadcast %7 : vector<1x128xf32> to vector<64x128xf32>
    %29 = arith.mulf %27, %28 : vector<64x128xf32>
    %c2_i32_19 = arith.constant 2 : i32
    %30 = tpu.dynamic_rotate %29 by %c2_i32_19 dim 1 : vector<64x128xf32>, i32 -> vector<64x128xf32>
    %c8_20 = arith.constant 8 : index
    %c0_21 = arith.constant 0 : index
    %31 = vector.load %arg13[%c8_20, %c0_21] : memref<328x128xf32, #tpu.memory_space<vmem>>, vector<64x128xf32>
    tpu.vector_store %arg13[%c8_20, %c0_21], %30 {strides = array<i32>} : memref<328x128xf32, #tpu.memory_space<vmem>>, vector<64x128xf32>,
    %c1_i32_22 = arith.constant 1 : i32
    %32 = tpu.dynamic_rotate %29 by %c1_i32_22 dim 1 : vector<64x128xf32>, i32 -> vector<64x128xf32>
    %c72 = arith.constant 72 : index
    %c0_23 = arith.constant 0 : index
    %33 = vector.load %arg13[%c72, %c0_23] : memref<328x128xf32, #tpu.memory_space<vmem>>, vector<64x128xf32>
    tpu.vector_store %arg13[%c72, %c0_23], %32 {strides = array<i32>} : memref<328x128xf32, #tpu.memory_space<vmem>>, vector<64x128xf32>,
    %c0_i32_24 = arith.constant 0 : i32
    %34 = tpu.dynamic_rotate %29 by %c0_i32_24 dim 1 : vector<64x128xf32>, i32 -> vector<64x128xf32>
    %c136 = arith.constant 136 : index
    %c0_25 = arith.constant 0 : index
    %35 = vector.load %arg13[%c136, %c0_25] : memref<328x128xf32, #tpu.memory_space<vmem>>, vector<64x128xf32>
    tpu.vector_store %arg13[%c136, %c0_25], %34 {strides = array<i32>} : memref<328x128xf32, #tpu.memory_space<vmem>>, vector<64x128xf32>,
    %c127_i32_26 = arith.constant 127 : i32
    %36 = tpu.dynamic_rotate %29 by %c127_i32_26 dim 1 : vector<64x128xf32>, i32 -> vector<64x128xf32>
    %c200 = arith.constant 200 : index
    %c0_27 = arith.constant 0 : index
    %37 = vector.load %arg13[%c200, %c0_27] : memref<328x128xf32, #tpu.memory_space<vmem>>, vector<64x128xf32>
    tpu.vector_store %arg13[%c200, %c0_27], %36 {strides = array<i32>} : memref<328x128xf32, #tpu.memory_space<vmem>>, vector<64x128xf32>,
    %c126_i32_28 = arith.constant 126 : i32
    %38 = tpu.dynamic_rotate %29 by %c126_i32_28 dim 1 : vector<64x128xf32>, i32 -> vector<64x128xf32>
    %c264 = arith.constant 264 : index
    %c0_29 = arith.constant 0 : index
    %39 = vector.load %arg13[%c264, %c0_29] : memref<328x128xf32, #tpu.memory_space<vmem>>, vector<64x128xf32>
    tpu.vector_store %arg13[%c264, %c0_29], %38 {strides = array<i32>} : memref<328x128xf32, #tpu.memory_space<vmem>>, vector<64x128xf32>,
    %c0_30 = arith.constant 0 : index
    %c0_31 = arith.constant 0 : index
    %40 = vector.load %arg5[%c0_30, %c0_31] : memref<32x328xf32, #tpu.memory_space<vmem>>, vector<32x328xf32>
    %c0_32 = arith.constant 0 : index
    %c0_33 = arith.constant 0 : index
    %41 = vector.load %arg13[%c0_32, %c0_33] : memref<328x128xf32, #tpu.memory_space<vmem>>, vector<328x128xf32>
    %cst_34 = arith.constant dense<0.000000e+00> : vector<32x128xf32>
    %42 = tpu.matmul %40, %41, %cst_34 {dimension_numbers = #tpu.dot_dimension_numbers<[1], [0], [0], [1], [0, 0, 1, 1], [], []>} : vector<32x328xf32>, vector<328x128xf32>, vector<32x128xf32> -> vector<32x128xf32>
    %c1 = arith.constant 1 : index
    %43 = memref.load %arg1[%c1] : memref<7xf32, #tpu.memory_space<smem>>
    %cst_35 = arith.constant 0.000000e+00 : f32
    %44 = vector.broadcast %cst_35 : f32 to vector<32x128xf32>
    %45 = arith.cmpf oge, %42, %44 : vector<32x128xf32>
    %46 = vector.broadcast %43 : f32 to vector<32x128xf32>
    %47 = arith.mulf %46, %42 : vector<32x128xf32>
    %48 = arith.select %45, %42, %47 : vector<32x128xi1>, vector<32x128xf32>
    %49 = vector.broadcast %7 : vector<1x128xf32> to vector<32x128xf32>
    %50 = arith.mulf %48, %49 : vector<32x128xf32>
    %c2_i32_36 = arith.constant 2 : i32
    %51 = tpu.dynamic_rotate %50 by %c2_i32_36 dim 1 : vector<32x128xf32>, i32 -> vector<32x128xf32>
    %c8_37 = arith.constant 8 : index
    %c0_38 = arith.constant 0 : index
    %52 = vector.load %arg13[%c8_37, %c0_38] : memref<328x128xf32, #tpu.memory_space<vmem>>, vector<32x128xf32>
    tpu.vector_store %arg13[%c8_37, %c0_38], %51 {strides = array<i32>} : memref<328x128xf32, #tpu.memory_space<vmem>>, vector<32x128xf32>,
    %c1_i32_39 = arith.constant 1 : i32
    %53 = tpu.dynamic_rotate %50 by %c1_i32_39 dim 1 : vector<32x128xf32>, i32 -> vector<32x128xf32>
    %c40_40 = arith.constant 40 : index
    %c0_41 = arith.constant 0 : index
    %54 = vector.load %arg13[%c40_40, %c0_41] : memref<328x128xf32, #tpu.memory_space<vmem>>, vector<32x128xf32>
    tpu.vector_store %arg13[%c40_40, %c0_41], %53 {strides = array<i32>} : memref<328x128xf32, #tpu.memory_space<vmem>>, vector<32x128xf32>,
    %c0_i32_42 = arith.constant 0 : i32
    %55 = tpu.dynamic_rotate %50 by %c0_i32_42 dim 1 : vector<32x128xf32>, i32 -> vector<32x128xf32>
    %c72_43 = arith.constant 72 : index
    %c0_44 = arith.constant 0 : index
    %56 = vector.load %arg13[%c72_43, %c0_44] : memref<328x128xf32, #tpu.memory_space<vmem>>, vector<32x128xf32>
    tpu.vector_store %arg13[%c72_43, %c0_44], %55 {strides = array<i32>} : memref<328x128xf32, #tpu.memory_space<vmem>>, vector<32x128xf32>,
    %c127_i32_45 = arith.constant 127 : i32
    %57 = tpu.dynamic_rotate %50 by %c127_i32_45 dim 1 : vector<32x128xf32>, i32 -> vector<32x128xf32>
    %c104 = arith.constant 104 : index
    %c0_46 = arith.constant 0 : index
    %58 = vector.load %arg13[%c104, %c0_46] : memref<328x128xf32, #tpu.memory_space<vmem>>, vector<32x128xf32>
    tpu.vector_store %arg13[%c104, %c0_46], %57 {strides = array<i32>} : memref<328x128xf32, #tpu.memory_space<vmem>>, vector<32x128xf32>,
    %c126_i32_47 = arith.constant 126 : i32
    %59 = tpu.dynamic_rotate %50 by %c126_i32_47 dim 1 : vector<32x128xf32>, i32 -> vector<32x128xf32>
    %c136_48 = arith.constant 136 : index
    %c0_49 = arith.constant 0 : index
    %60 = vector.load %arg13[%c136_48, %c0_49] : memref<328x128xf32, #tpu.memory_space<vmem>>, vector<32x128xf32>
    tpu.vector_store %arg13[%c136_48, %c0_49], %59 {strides = array<i32>} : memref<328x128xf32, #tpu.memory_space<vmem>>, vector<32x128xf32>,
    %c0_50 = arith.constant 0 : index
    %c0_51 = arith.constant 0 : index
    %61 = vector.load %arg6[%c0_50, %c0_51] : memref<16x168xf32, #tpu.memory_space<vmem>>, vector<16x168xf32>
    %c0_52 = arith.constant 0 : index
    %c0_53 = arith.constant 0 : index
    %62 = vector.load %arg13[%c0_52, %c0_53] : memref<328x128xf32, #tpu.memory_space<vmem>>, vector<168x128xf32>
    %cst_54 = arith.constant dense<0.000000e+00> : vector<16x128xf32>
    %63 = tpu.matmul %61, %62, %cst_54 {dimension_numbers = #tpu.dot_dimension_numbers<[1], [0], [0], [1], [0, 0, 1, 1], [], []>} : vector<16x168xf32>, vector<168x128xf32>, vector<16x128xf32> -> vector<16x128xf32>
    %c2 = arith.constant 2 : index
    %64 = memref.load %arg1[%c2] : memref<7xf32, #tpu.memory_space<smem>>
    %cst_55 = arith.constant 0.000000e+00 : f32
    %65 = vector.broadcast %cst_55 : f32 to vector<16x128xf32>
    %66 = arith.cmpf oge, %63, %65 : vector<16x128xf32>
    %67 = vector.broadcast %64 : f32 to vector<16x128xf32>
    %68 = arith.mulf %67, %63 : vector<16x128xf32>
    %69 = arith.select %66, %63, %68 : vector<16x128xi1>, vector<16x128xf32>
    %70 = vector.broadcast %7 : vector<1x128xf32> to vector<16x128xf32>
    %71 = arith.mulf %69, %70 : vector<16x128xf32>
    %c2_i32_56 = arith.constant 2 : i32
    %72 = tpu.dynamic_rotate %71 by %c2_i32_56 dim 1 : vector<16x128xf32>, i32 -> vector<16x128xf32>
    %c8_57 = arith.constant 8 : index
    %c0_58 = arith.constant 0 : index
    %73 = vector.load %arg13[%c8_57, %c0_58] : memref<328x128xf32, #tpu.memory_space<vmem>>, vector<16x128xf32>
    tpu.vector_store %arg13[%c8_57, %c0_58], %72 {strides = array<i32>} : memref<328x128xf32, #tpu.memory_space<vmem>>, vector<16x128xf32>,
    %c1_i32_59 = arith.constant 1 : i32
    %74 = tpu.dynamic_rotate %71 by %c1_i32_59 dim 1 : vector<16x128xf32>, i32 -> vector<16x128xf32>
    %c24_60 = arith.constant 24 : index
    %c0_61 = arith.constant 0 : index
    %75 = vector.load %arg13[%c24_60, %c0_61] : memref<328x128xf32, #tpu.memory_space<vmem>>, vector<16x128xf32>
    tpu.vector_store %arg13[%c24_60, %c0_61], %74 {strides = array<i32>} : memref<328x128xf32, #tpu.memory_space<vmem>>, vector<16x128xf32>,
    %c0_i32_62 = arith.constant 0 : i32
    %76 = tpu.dynamic_rotate %71 by %c0_i32_62 dim 1 : vector<16x128xf32>, i32 -> vector<16x128xf32>
    %c40_63 = arith.constant 40 : index
    %c0_64 = arith.constant 0 : index
    %77 = vector.load %arg13[%c40_63, %c0_64] : memref<328x128xf32, #tpu.memory_space<vmem>>, vector<16x128xf32>
    tpu.vector_store %arg13[%c40_63, %c0_64], %76 {strides = array<i32>} : memref<328x128xf32, #tpu.memory_space<vmem>>, vector<16x128xf32>,
    %c127_i32_65 = arith.constant 127 : i32
    %78 = tpu.dynamic_rotate %71 by %c127_i32_65 dim 1 : vector<16x128xf32>, i32 -> vector<16x128xf32>
    %c56 = arith.constant 56 : index
    %c0_66 = arith.constant 0 : index
    %79 = vector.load %arg13[%c56, %c0_66] : memref<328x128xf32, #tpu.memory_space<vmem>>, vector<16x128xf32>
    tpu.vector_store %arg13[%c56, %c0_66], %78 {strides = array<i32>} : memref<328x128xf32, #tpu.memory_space<vmem>>, vector<16x128xf32>,
    %c126_i32_67 = arith.constant 126 : i32
    %80 = tpu.dynamic_rotate %71 by %c126_i32_67 dim 1 : vector<16x128xf32>, i32 -> vector<16x128xf32>
    %c72_68 = arith.constant 72 : index
    %c0_69 = arith.constant 0 : index
    %81 = vector.load %arg13[%c72_68, %c0_69] : memref<328x128xf32, #tpu.memory_space<vmem>>, vector<16x128xf32>
    tpu.vector_store %arg13[%c72_68, %c0_69], %80 {strides = array<i32>} : memref<328x128xf32, #tpu.memory_space<vmem>>, vector<16x128xf32>,
    %c0_70 = arith.constant 0 : index
    %c0_71 = arith.constant 0 : index
    %82 = vector.load %arg7[%c0_70, %c0_71] : memref<8x88xf32, #tpu.memory_space<vmem>>, vector<8x88xf32>
    %c0_72 = arith.constant 0 : index
    %c0_73 = arith.constant 0 : index
    %83 = vector.load %arg13[%c0_72, %c0_73] : memref<328x128xf32, #tpu.memory_space<vmem>>, vector<88x128xf32>
    %cst_74 = arith.constant dense<0.000000e+00> : vector<8x128xf32>
    %84 = tpu.matmul %82, %83, %cst_74 {dimension_numbers = #tpu.dot_dimension_numbers<[1], [0], [0], [1], [0, 0, 1, 1], [], []>} : vector<8x88xf32>, vector<88x128xf32>, vector<8x128xf32> -> vector<8x128xf32>
    %c3 = arith.constant 3 : index
    %85 = memref.load %arg1[%c3] : memref<7xf32, #tpu.memory_space<smem>>
    %cst_75 = arith.constant 0.000000e+00 : f32
    %86 = vector.broadcast %cst_75 : f32 to vector<8x128xf32>
    %87 = arith.cmpf oge, %84, %86 : vector<8x128xf32>
    %88 = vector.broadcast %85 : f32 to vector<8x128xf32>
    %89 = arith.mulf %88, %84 : vector<8x128xf32>
    %90 = arith.select %87, %84, %89 : vector<8x128xi1>, vector<8x128xf32>
    %91 = vector.broadcast %7 : vector<1x128xf32> to vector<8x128xf32>
    %92 = arith.mulf %90, %91 : vector<8x128xf32>
    %c2_i32_76 = arith.constant 2 : i32
    %93 = tpu.dynamic_rotate %92 by %c2_i32_76 dim 1 : vector<8x128xf32>, i32 -> vector<8x128xf32>
    %c8_77 = arith.constant 8 : index
    %c0_78 = arith.constant 0 : index
    %94 = vector.load %arg13[%c8_77, %c0_78] : memref<328x128xf32, #tpu.memory_space<vmem>>, vector<8x128xf32>
    tpu.vector_store %arg13[%c8_77, %c0_78], %93 {strides = array<i32>} : memref<328x128xf32, #tpu.memory_space<vmem>>, vector<8x128xf32>,
    %c1_i32_79 = arith.constant 1 : i32
    %95 = tpu.dynamic_rotate %92 by %c1_i32_79 dim 1 : vector<8x128xf32>, i32 -> vector<8x128xf32>
    %c16_80 = arith.constant 16 : index
    %c0_81 = arith.constant 0 : index
    %96 = vector.load %arg13[%c16_80, %c0_81] : memref<328x128xf32, #tpu.memory_space<vmem>>, vector<8x128xf32>
    tpu.vector_store %arg13[%c16_80, %c0_81], %95 {strides = array<i32>} : memref<328x128xf32, #tpu.memory_space<vmem>>, vector<8x128xf32>,
    %c0_i32_82 = arith.constant 0 : i32
    %97 = tpu.dynamic_rotate %92 by %c0_i32_82 dim 1 : vector<8x128xf32>, i32 -> vector<8x128xf32>
    %c24_83 = arith.constant 24 : index
    %c0_84 = arith.constant 0 : index
    %98 = vector.load %arg13[%c24_83, %c0_84] : memref<328x128xf32, #tpu.memory_space<vmem>>, vector<8x128xf32>
    tpu.vector_store %arg13[%c24_83, %c0_84], %97 {strides = array<i32>} : memref<328x128xf32, #tpu.memory_space<vmem>>, vector<8x128xf32>,
    %c127_i32_85 = arith.constant 127 : i32
    %99 = tpu.dynamic_rotate %92 by %c127_i32_85 dim 1 : vector<8x128xf32>, i32 -> vector<8x128xf32>
    %c32_86 = arith.constant 32 : index
    %c0_87 = arith.constant 0 : index
    %100 = vector.load %arg13[%c32_86, %c0_87] : memref<328x128xf32, #tpu.memory_space<vmem>>, vector<8x128xf32>
    tpu.vector_store %arg13[%c32_86, %c0_87], %99 {strides = array<i32>} : memref<328x128xf32, #tpu.memory_space<vmem>>, vector<8x128xf32>,
    %c126_i32_88 = arith.constant 126 : i32
    %101 = tpu.dynamic_rotate %92 by %c126_i32_88 dim 1 : vector<8x128xf32>, i32 -> vector<8x128xf32>
    %c40_89 = arith.constant 40 : index
    %c0_90 = arith.constant 0 : index
    %102 = vector.load %arg13[%c40_89, %c0_90] : memref<328x128xf32, #tpu.memory_space<vmem>>, vector<8x128xf32>
    tpu.vector_store %arg13[%c40_89, %c0_90], %101 {strides = array<i32>} : memref<328x128xf32, #tpu.memory_space<vmem>>, vector<8x128xf32>,
    %c0_91 = arith.constant 0 : index
    %c0_92 = arith.constant 0 : index
    %103 = vector.load %arg8[%c0_91, %c0_92] : memref<16x48xf32, #tpu.memory_space<vmem>>, vector<16x48xf32>
    %c0_93 = arith.constant 0 : index
    %c0_94 = arith.constant 0 : index
    %104 = vector.load %arg13[%c0_93, %c0_94] : memref<328x128xf32, #tpu.memory_space<vmem>>, vector<48x128xf32>
    %cst_95 = arith.constant dense<0.000000e+00> : vector<16x128xf32>
    %105 = tpu.matmul %103, %104, %cst_95 {dimension_numbers = #tpu.dot_dimension_numbers<[1], [0], [0], [1], [0, 0, 1, 1], [], []>} : vector<16x48xf32>, vector<48x128xf32>, vector<16x128xf32> -> vector<16x128xf32>
    %c4 = arith.constant 4 : index
    %106 = memref.load %arg1[%c4] : memref<7xf32, #tpu.memory_space<smem>>
    %cst_96 = arith.constant 0.000000e+00 : f32
    %107 = vector.broadcast %cst_96 : f32 to vector<16x128xf32>
    %108 = arith.cmpf oge, %105, %107 : vector<16x128xf32>
    %109 = vector.broadcast %106 : f32 to vector<16x128xf32>
    %110 = arith.mulf %109, %105 : vector<16x128xf32>
    %111 = arith.select %108, %105, %110 : vector<16x128xi1>, vector<16x128xf32>
    %112 = vector.broadcast %7 : vector<1x128xf32> to vector<16x128xf32>
    %113 = arith.mulf %111, %112 : vector<16x128xf32>
    %c2_i32_97 = arith.constant 2 : i32
    %114 = tpu.dynamic_rotate %113 by %c2_i32_97 dim 1 : vector<16x128xf32>, i32 -> vector<16x128xf32>
    %c8_98 = arith.constant 8 : index
    %c0_99 = arith.constant 0 : index
    %115 = vector.load %arg13[%c8_98, %c0_99] : memref<328x128xf32, #tpu.memory_space<vmem>>, vector<16x128xf32>
    tpu.vector_store %arg13[%c8_98, %c0_99], %114 {strides = array<i32>} : memref<328x128xf32, #tpu.memory_space<vmem>>, vector<16x128xf32>,
    %c1_i32_100 = arith.constant 1 : i32
    %116 = tpu.dynamic_rotate %113 by %c1_i32_100 dim 1 : vector<16x128xf32>, i32 -> vector<16x128xf32>
    %c24_101 = arith.constant 24 : index
    %c0_102 = arith.constant 0 : index
    %117 = vector.load %arg13[%c24_101, %c0_102] : memref<328x128xf32, #tpu.memory_space<vmem>>, vector<16x128xf32>
    tpu.vector_store %arg13[%c24_101, %c0_102], %116 {strides = array<i32>} : memref<328x128xf32, #tpu.memory_space<vmem>>, vector<16x128xf32>,
    %c0_i32_103 = arith.constant 0 : i32
    %118 = tpu.dynamic_rotate %113 by %c0_i32_103 dim 1 : vector<16x128xf32>, i32 -> vector<16x128xf32>
    %c40_104 = arith.constant 40 : index
    %c0_105 = arith.constant 0 : index
    %119 = vector.load %arg13[%c40_104, %c0_105] : memref<328x128xf32, #tpu.memory_space<vmem>>, vector<16x128xf32>
    tpu.vector_store %arg13[%c40_104, %c0_105], %118 {strides = array<i32>} : memref<328x128xf32, #tpu.memory_space<vmem>>, vector<16x128xf32>,
    %c127_i32_106 = arith.constant 127 : i32
    %120 = tpu.dynamic_rotate %113 by %c127_i32_106 dim 1 : vector<16x128xf32>, i32 -> vector<16x128xf32>
    %c56_107 = arith.constant 56 : index
    %c0_108 = arith.constant 0 : index
    %121 = vector.load %arg13[%c56_107, %c0_108] : memref<328x128xf32, #tpu.memory_space<vmem>>, vector<16x128xf32>
    tpu.vector_store %arg13[%c56_107, %c0_108], %120 {strides = array<i32>} : memref<328x128xf32, #tpu.memory_space<vmem>>, vector<16x128xf32>,
    %c126_i32_109 = arith.constant 126 : i32
    %122 = tpu.dynamic_rotate %113 by %c126_i32_109 dim 1 : vector<16x128xf32>, i32 -> vector<16x128xf32>
    %c72_110 = arith.constant 72 : index
    %c0_111 = arith.constant 0 : index
    %123 = vector.load %arg13[%c72_110, %c0_111] : memref<328x128xf32, #tpu.memory_space<vmem>>, vector<16x128xf32>
    tpu.vector_store %arg13[%c72_110, %c0_111], %122 {strides = array<i32>} : memref<328x128xf32, #tpu.memory_space<vmem>>, vector<16x128xf32>,
    %c0_112 = arith.constant 0 : index
    %c0_113 = arith.constant 0 : index
    %124 = vector.load %arg9[%c0_112, %c0_113] : memref<32x88xf32, #tpu.memory_space<vmem>>, vector<32x88xf32>
    %c0_114 = arith.constant 0 : index
    %c0_115 = arith.constant 0 : index
    %125 = vector.load %arg13[%c0_114, %c0_115] : memref<328x128xf32, #tpu.memory_space<vmem>>, vector<88x128xf32>
    %cst_116 = arith.constant dense<0.000000e+00> : vector<32x128xf32>
    %126 = tpu.matmul %124, %125, %cst_116 {dimension_numbers = #tpu.dot_dimension_numbers<[1], [0], [0], [1], [0, 0, 1, 1], [], []>} : vector<32x88xf32>, vector<88x128xf32>, vector<32x128xf32> -> vector<32x128xf32>
    %c5 = arith.constant 5 : index
    %127 = memref.load %arg1[%c5] : memref<7xf32, #tpu.memory_space<smem>>
    %cst_117 = arith.constant 0.000000e+00 : f32
    %128 = vector.broadcast %cst_117 : f32 to vector<32x128xf32>
    %129 = arith.cmpf oge, %126, %128 : vector<32x128xf32>
    %130 = vector.broadcast %127 : f32 to vector<32x128xf32>
    %131 = arith.mulf %130, %126 : vector<32x128xf32>
    %132 = arith.select %129, %126, %131 : vector<32x128xi1>, vector<32x128xf32>
    %133 = vector.broadcast %7 : vector<1x128xf32> to vector<32x128xf32>
    %134 = arith.mulf %132, %133 : vector<32x128xf32>
    %c2_i32_118 = arith.constant 2 : i32
    %135 = tpu.dynamic_rotate %134 by %c2_i32_118 dim 1 : vector<32x128xf32>, i32 -> vector<32x128xf32>
    %c8_119 = arith.constant 8 : index
    %c0_120 = arith.constant 0 : index
    %136 = vector.load %arg13[%c8_119, %c0_120] : memref<328x128xf32, #tpu.memory_space<vmem>>, vector<32x128xf32>
    tpu.vector_store %arg13[%c8_119, %c0_120], %135 {strides = array<i32>} : memref<328x128xf32, #tpu.memory_space<vmem>>, vector<32x128xf32>,
    %c1_i32_121 = arith.constant 1 : i32
    %137 = tpu.dynamic_rotate %134 by %c1_i32_121 dim 1 : vector<32x128xf32>, i32 -> vector<32x128xf32>
    %c40_122 = arith.constant 40 : index
    %c0_123 = arith.constant 0 : index
    %138 = vector.load %arg13[%c40_122, %c0_123] : memref<328x128xf32, #tpu.memory_space<vmem>>, vector<32x128xf32>
    tpu.vector_store %arg13[%c40_122, %c0_123], %137 {strides = array<i32>} : memref<328x128xf32, #tpu.memory_space<vmem>>, vector<32x128xf32>,
    %c0_i32_124 = arith.constant 0 : i32
    %139 = tpu.dynamic_rotate %134 by %c0_i32_124 dim 1 : vector<32x128xf32>, i32 -> vector<32x128xf32>
    %c72_125 = arith.constant 72 : index
    %c0_126 = arith.constant 0 : index
    %140 = vector.load %arg13[%c72_125, %c0_126] : memref<328x128xf32, #tpu.memory_space<vmem>>, vector<32x128xf32>
    tpu.vector_store %arg13[%c72_125, %c0_126], %139 {strides = array<i32>} : memref<328x128xf32, #tpu.memory_space<vmem>>, vector<32x128xf32>,
    %c127_i32_127 = arith.constant 127 : i32
    %141 = tpu.dynamic_rotate %134 by %c127_i32_127 dim 1 : vector<32x128xf32>, i32 -> vector<32x128xf32>
    %c104_128 = arith.constant 104 : index
    %c0_129 = arith.constant 0 : index
    %142 = vector.load %arg13[%c104_128, %c0_129] : memref<328x128xf32, #tpu.memory_space<vmem>>, vector<32x128xf32>
    tpu.vector_store %arg13[%c104_128, %c0_129], %141 {strides = array<i32>} : memref<328x128xf32, #tpu.memory_space<vmem>>, vector<32x128xf32>,
    %c126_i32_130 = arith.constant 126 : i32
    %143 = tpu.dynamic_rotate %134 by %c126_i32_130 dim 1 : vector<32x128xf32>, i32 -> vector<32x128xf32>
    %c136_131 = arith.constant 136 : index
    %c0_132 = arith.constant 0 : index
    %144 = vector.load %arg13[%c136_131, %c0_132] : memref<328x128xf32, #tpu.memory_space<vmem>>, vector<32x128xf32>
    tpu.vector_store %arg13[%c136_131, %c0_132], %143 {strides = array<i32>} : memref<328x128xf32, #tpu.memory_space<vmem>>, vector<32x128xf32>,
    %c0_133 = arith.constant 0 : index
    %c0_134 = arith.constant 0 : index
    %145 = vector.load %arg10[%c0_133, %c0_134] : memref<64x168xf32, #tpu.memory_space<vmem>>, vector<64x168xf32>
    %c0_135 = arith.constant 0 : index
    %c0_136 = arith.constant 0 : index
    %146 = vector.load %arg13[%c0_135, %c0_136] : memref<328x128xf32, #tpu.memory_space<vmem>>, vector<168x128xf32>
    %cst_137 = arith.constant dense<0.000000e+00> : vector<64x128xf32>
    %147 = tpu.matmul %145, %146, %cst_137 {dimension_numbers = #tpu.dot_dimension_numbers<[1], [0], [0], [1], [0, 0, 1, 1], [], []>} : vector<64x168xf32>, vector<168x128xf32>, vector<64x128xf32> -> vector<64x128xf32>
    %c6 = arith.constant 6 : index
    %148 = memref.load %arg1[%c6] : memref<7xf32, #tpu.memory_space<smem>>
    %cst_138 = arith.constant 0.000000e+00 : f32
    %149 = vector.broadcast %cst_138 : f32 to vector<64x128xf32>
    %150 = arith.cmpf oge, %147, %149 : vector<64x128xf32>
    %151 = vector.broadcast %148 : f32 to vector<64x128xf32>
    %152 = arith.mulf %151, %147 : vector<64x128xf32>
    %153 = arith.select %150, %147, %152 : vector<64x128xi1>, vector<64x128xf32>
    %154 = vector.broadcast %7 : vector<1x128xf32> to vector<64x128xf32>
    %155 = arith.mulf %153, %154 : vector<64x128xf32>
    %c2_i32_139 = arith.constant 2 : i32
    %156 = tpu.dynamic_rotate %155 by %c2_i32_139 dim 1 : vector<64x128xf32>, i32 -> vector<64x128xf32>
    %c8_140 = arith.constant 8 : index
    %c0_141 = arith.constant 0 : index
    %157 = vector.load %arg13[%c8_140, %c0_141] : memref<328x128xf32, #tpu.memory_space<vmem>>, vector<64x128xf32>
    tpu.vector_store %arg13[%c8_140, %c0_141], %156 {strides = array<i32>} : memref<328x128xf32, #tpu.memory_space<vmem>>, vector<64x128xf32>,
    %c1_i32_142 = arith.constant 1 : i32
    %158 = tpu.dynamic_rotate %155 by %c1_i32_142 dim 1 : vector<64x128xf32>, i32 -> vector<64x128xf32>
    %c72_143 = arith.constant 72 : index
    %c0_144 = arith.constant 0 : index
    %159 = vector.load %arg13[%c72_143, %c0_144] : memref<328x128xf32, #tpu.memory_space<vmem>>, vector<64x128xf32>
    tpu.vector_store %arg13[%c72_143, %c0_144], %158 {strides = array<i32>} : memref<328x128xf32, #tpu.memory_space<vmem>>, vector<64x128xf32>,
    %c0_i32_145 = arith.constant 0 : i32
    %160 = tpu.dynamic_rotate %155 by %c0_i32_145 dim 1 : vector<64x128xf32>, i32 -> vector<64x128xf32>
    %c136_146 = arith.constant 136 : index
    %c0_147 = arith.constant 0 : index
    %161 = vector.load %arg13[%c136_146, %c0_147] : memref<328x128xf32, #tpu.memory_space<vmem>>, vector<64x128xf32>
    tpu.vector_store %arg13[%c136_146, %c0_147], %160 {strides = array<i32>} : memref<328x128xf32, #tpu.memory_space<vmem>>, vector<64x128xf32>,
    %c127_i32_148 = arith.constant 127 : i32
    %162 = tpu.dynamic_rotate %155 by %c127_i32_148 dim 1 : vector<64x128xf32>, i32 -> vector<64x128xf32>
    %c200_149 = arith.constant 200 : index
    %c0_150 = arith.constant 0 : index
    %163 = vector.load %arg13[%c200_149, %c0_150] : memref<328x128xf32, #tpu.memory_space<vmem>>, vector<64x128xf32>
    tpu.vector_store %arg13[%c200_149, %c0_150], %162 {strides = array<i32>} : memref<328x128xf32, #tpu.memory_space<vmem>>, vector<64x128xf32>,
    %c126_i32_151 = arith.constant 126 : i32
    %164 = tpu.dynamic_rotate %155 by %c126_i32_151 dim 1 : vector<64x128xf32>, i32 -> vector<64x128xf32>
    %c264_152 = arith.constant 264 : index
    %c0_153 = arith.constant 0 : index
    %165 = vector.load %arg13[%c264_152, %c0_153] : memref<328x128xf32, #tpu.memory_space<vmem>>, vector<64x128xf32>
    tpu.vector_store %arg13[%c264_152, %c0_153], %164 {strides = array<i32>} : memref<328x128xf32, #tpu.memory_space<vmem>>, vector<64x128xf32>,
    %c0_154 = arith.constant 0 : index
    %c0_155 = arith.constant 0 : index
    %166 = vector.load %arg11[%c0_154, %c0_155] : memref<8x328xf32, #tpu.memory_space<vmem>>, vector<8x328xf32>
    %c0_156 = arith.constant 0 : index
    %c0_157 = arith.constant 0 : index
    %167 = vector.load %arg13[%c0_156, %c0_157] : memref<328x128xf32, #tpu.memory_space<vmem>>, vector<328x128xf32>
    %cst_158 = arith.constant dense<0.000000e+00> : vector<8x128xf32>
    %168 = tpu.matmul %166, %167, %cst_158 {dimension_numbers = #tpu.dot_dimension_numbers<[1], [0], [0], [1], [0, 0, 1, 1], [], []>} : vector<8x328xf32>, vector<328x128xf32>, vector<8x128xf32> -> vector<8x128xf32>
    %c0_159 = arith.constant 0 : index
    %c0_160 = arith.constant 0 : index
    %169 = vector.load %arg12[%c0_159, %c0_160] : memref<8x128xf32, #tpu.memory_space<vmem>>, vector<8x128xf32>
    tpu.vector_store %arg12[%c0_159, %c0_160], %168 {strides = array<i32>} : memref<8x128xf32, #tpu.memory_space<vmem>>, vector<8x128xf32>,
    return
  }
  func.func @transform_0(%arg0: i32) -> i32 {
    %c0_i32 = arith.constant 0 : i32
    %c0_i32_0 = arith.constant 0 : i32
    return %c0_i32 : i32
  }
  func.func @transform_1(%arg0: i32) -> (i32, i32) {
    %c0_i32 = arith.constant 0 : i32
    %c0_i32_0 = arith.constant 0 : i32
    %c0_i32_1 = arith.constant 0 : i32
    return %c0_i32, %c0_i32_0 : i32, i32
  }
  func.func @transform_2(%arg0: i32) -> (i32, i32) {
    %c0_i32 = arith.constant 0 : i32
    %c0_i32_0 = arith.constant 0 : i32
    %c0_i32_1 = arith.constant 0 : i32
    return %c0_i32, %c0_i32_0 : i32, i32
  }
  func.func @transform_3(%arg0: i32) -> (i32, i32) {
    %c0_i32 = arith.constant 0 : i32
    %c0_i32_0 = arith.constant 0 : i32
    %c0_i32_1 = arith.constant 0 : i32
    return %c0_i32, %c0_i32_0 : i32, i32
  }
  func.func @transform_4(%arg0: i32) -> (i32, i32) {
    %c0_i32 = arith.constant 0 : i32
    %c0_i32_0 = arith.constant 0 : i32
    %c0_i32_1 = arith.constant 0 : i32
    return %c0_i32, %c0_i32_0 : i32, i32
  }
  func.func @transform_5(%arg0: i32) -> (i32, i32) {
    %c0_i32 = arith.constant 0 : i32
    %c0_i32_0 = arith.constant 0 : i32
    %c0_i32_1 = arith.constant 0 : i32
    return %c0_i32, %c0_i32_0 : i32, i32
  }
  func.func @transform_6(%arg0: i32) -> (i32, i32) {
    %c0_i32 = arith.constant 0 : i32
    %c0_i32_0 = arith.constant 0 : i32
    %c0_i32_1 = arith.constant 0 : i32
    return %c0_i32, %c0_i32_0 : i32, i32
  }
  func.func @transform_7(%arg0: i32) -> (i32, i32) {
    %c0_i32 = arith.constant 0 : i32
    %c0_i32_0 = arith.constant 0 : i32
    %c0_i32_1 = arith.constant 0 : i32
    return %c0_i32, %c0_i32_0 : i32, i32
  }
  func.func @transform_8(%arg0: i32) -> (i32, i32) {
    %c0_i32 = arith.constant 0 : i32
    %c0_i32_0 = arith.constant 0 : i32
    %c0_i32_1 = arith.constant 0 : i32
    return %c0_i32, %c0_i32_0 : i32, i32
  }
  func.func @transform_9(%arg0: i32) -> (i32, i32) {
    %c0_i32 = arith.constant 0 : i32
    %c0_i32_0 = arith.constant 0 : i32
    %c0_i32_1 = arith.constant 0 : i32
    return %c0_i32, %c0_i32_0 : i32, i32
  }
  func.func @transform_10(%arg0: i32) -> (i32, i32) {
    %c0_i32 = arith.constant 0 : i32
    %c0_i32_0 = arith.constant 0 : i32
    %c0_i32_1 = arith.constant 0 : i32
    return %c0_i32, %c0_i32_0 : i32, i32
  }
  func.func @transform_11(%arg0: i32) -> (i32, i32) {
    %c0_i32 = arith.constant 0 : i32
    %c0_i32_0 = arith.constant 0 : i32
    %c0_i32_1 = arith.constant 0 : i32
    return %c0_i32, %c0_i32_0 : i32, i32
  }
}

</mosaic_0001>

<bundles_post_ra>
// kernel: tpu_custom_call.1
= control target key start
LH: loop header
LB: loop body
LE: loop exit
PB: predicated region body
PF: predicated region fallthrough
CT: control target
= control target key end

     0   :  { %16 = vsyncpa [#allocation6], 0  ;;  %s2319_s0 = inlined_call_operand.vmem [shape: f32[7], index: 0, kind: input, shape index: {}]   ;;  %s2320_s1 = inlined_call_operand.hbm [shape: f32[1,128], index: 1, kind: input, shape index: {}]   ;;  %s2321_s2 = inlined_call_operand.hbm [shape: f32[8,128], index: 2, kind: input, shape index: {}]   ;;  %s2322_s3 = inlined_call_operand.vmem [shape: f32[64,48], index: 3, kind: input, shape index: {}]   ;;  %s2323_s4 = inlined_call_operand.vmem [shape: f32[32,328], index: 4, kind: input, shape index: {}]   ;;  %s2324_s5 = inlined_call_operand.hbm [shape: f32[16,168], index: 5, kind: input, shape index: {}]   ;;  %s2325_s6 = inlined_call_operand.hbm [shape: f32[8,88], index: 6, kind: input, shape index: {}]   ;;  %s2326_s7 = inlined_call_operand.hbm [shape: f32[16,48], index: 7, kind: input, shape index: {}]   ;;  %s2327_s8 = inlined_call_operand.hbm [shape: f32[32,88], index: 8, kind: input, shape index: {}]   ;;  %s2328_s9 = inlined_call_operand.hbm [shape: f32[64,168], index: 9, kind: input, shape index: {}]   ;;  %s2329_s10 = inlined_call_operand.vmem [shape: f32[8,328], index: 10, kind: input, shape index: {}]   ;;  %s2330_s11 = inlined_call_operand.hbm [shape: f32[8,128], index: 11, kind: output, shape index: {}]  }
   0x1   :  { %17 = vsyncpa [#allocation4], 0 }
   0x2   :  { %18 = vsyncpa [#allocation9], 0 }
   0x3   :  { %19 = vsyncpa [#allocation12], 0 }
   0x4   :  { %20 = vsyncpa [#allocation15], 0  ;;  %s47_s19 = sshll.u32 %s2321_s2, 4  ;;  %s48_s19 = int_to_ptr.hbm [resolvable:$true] %s47_s19 }
   0x5   :  { %21 = vsyncpa [#allocation5], 0  ;;  %s1927_s20 = smov [#allocation8]   ;;  %s75_s24 = sshll.u32 %s2325_s6, 4  ;;  %s76_s24 = int_to_ptr.hbm [resolvable:$true] %s75_s24 }
   0x6   :  { %s49_s21 = sshll.u32 %s1927_s20, 4  ;;  %s1928_s25 = smov [#allocation11]   ;;  %s50_s21 = int_to_ptr.vmem [resolvable:$true] %s49_s21 }
   0x7   :  { %52 = dma.hbm_to_vmem [thread:$0]  %s48_s19, 128, %s50_s21, [#allocation9]  }
   0x8   :  { %s77_s26 = sshll.u32 %s1928_s25, 4  ;;  %s98_s29 = sshll.u32 %s2327_s8, 4  ;;  %s78_s26 = int_to_ptr.vmem [resolvable:$true] %s77_s26  ;;  %s99_s29 = int_to_ptr.hbm [resolvable:$true] %s98_s29 }
   0x9   :  { %80 = dma.hbm_to_vmem [thread:$0]  %s76_s24, 128, %s78_s26, [#allocation12]  }
   0xa   :  { %s1929_s2 = smov [#allocation14]   ;;  %s27_s14 = sshll.u32 %s2319_s0, 4  ;;  %s28_s14 = int_to_ptr.vmem [resolvable:$true] %s27_s14 }
   0xb   :  { %s100_s30 = sshll.u32 %s1929_s2, 4  ;;  %s1930_s15 = smov 128   ;;  %s101_s30 = int_to_ptr.vmem [resolvable:$true] %s100_s30 }
   0xc   :  { %s1931_s6 = smov 8   ;;  %s1932_s16 = smov [#allocation3]  }
   0xd   :  { %106 = dma.hbm_to_vmem [thread:$0]  %s99_s29, 512, %s101_s30, [#allocation15], %s1930_s15, %s1930_s15, %s1931_s6  }
   0xe   :  { %30 = dma.vmem_to_smem %s28_s14, 16, %s1932_s16, [#allocation6]  }
   0xf   :  { %s36_s19 = sshll.u32 %s2320_s1, 4  ;;  %s1933_s8 = smov [#allocation7]   ;;  %s37_s19 = int_to_ptr.hbm [resolvable:$true] %s36_s19 }
  0x10   :  { %s38_s20 = sshll.u32 %s1933_s8, 4  ;;  %s61_s23 = sshll.u32 %s2324_s5, 4  ;;  %s39_s20 = int_to_ptr.vmem [resolvable:$true] %s38_s20  ;;  %s62_s23 = int_to_ptr.hbm [resolvable:$true] %s61_s23 }
  0x11   :  { %41 = dma.hbm_to_vmem [thread:$0]  %s37_s19, 16, %s39_s20, [#allocation4]  }
  0x12   :  { %s1934_s0 = smov [#allocation10]   ;;  %s1935_s25 = smov 256  }
  0x13   :  { %s63_s24 = sshll.u32 %s1934_s0, 4  ;;  %s1936_s26 = smov 16   ;;  %s64_s24 = int_to_ptr.vmem [resolvable:$true] %s63_s24 }
  0x14   :  { %69 = dma.hbm_to_vmem [thread:$0]  %s62_s23, 512, %s64_s24, [#allocation9], %s1935_s25, %s1935_s25, %s1936_s26  }
  0x15   :  { %s85_s1 = sshll.u32 %s2326_s7, 4  ;;  %s1937_s29 = smov [#allocation13]   ;;  %s86_s1 = int_to_ptr.hbm [resolvable:$true] %s85_s1 }
  0x16   :  { %s87_s2 = sshll.u32 %s1937_s29, 4  ;;  %s111_s5 = sshll.u32 %s2328_s9, 4  ;;  %s88_s2 = int_to_ptr.vmem [resolvable:$true] %s87_s2  ;;  %s112_s5 = int_to_ptr.hbm [resolvable:$true] %s111_s5 }
  0x17   :  { %93 = dma.hbm_to_vmem [thread:$0]  %s86_s1, 256, %s88_s2, [#allocation12], %s1930_s15, %s1930_s15, %s1931_s6  }
  0x18   :  { %s1938_s13 = smov [#allocation16]  }
  0x19   :  { %s113_s14 = sshll.u32 %s1938_s13, 4  ;;  %s114_s14 = int_to_ptr.vmem [resolvable:$true] %s113_s14 }
  0x1a   :  { %119 = dma.hbm_to_vmem [thread:$0]  %s112_s5, 2048, %s114_s14, [#allocation15], %s1935_s25, %s1935_s25, %s1936_s26  }
  0x1b   :  { %1915 = dma.done.wait [#allocation6], 16  }
  0x1c   :  { %1916 = vsyncadd [#allocation6], 4294967280 }
  0x1d   :  { %1917 = dma.done.wait [#allocation4], 16  }
  0x1e   :  { %1918 = vsyncadd [#allocation4], 4294967280 }
  0x1f   :  { %1919 = dma.done.wait [#allocation9], 640  }
  0x20   :  { %1920 = vsyncadd [#allocation9], 4294966656 }
  0x21   :  { %1921 = dma.done.wait [#allocation12], 384  }
  0x22   :  { %1922 = vsyncadd [#allocation12], 4294966912 }
  0x23   :  { %1923 = dma.done.wait [#allocation15], 2560  }
  0x24   :  { %1924 = vsyncadd [#allocation15], 4294964736 }
  0x25   :  { %154 = sfence }
  0x26   :  { %v161_v0 = vld [vmem:[#allocation8] sm:$0xff]  ;;  %s1939_s7 = smov 126   ;;  %s1940_s9 = smov 1   ;;  %v155_v3 = vlaneseq  ;;  %vm189_vm1 = vcmask 392192   ;;  %v1943_v8 = vmov 1.0   ;;  %v177_v10 = vld [vmem:[%s2322_s3 + $0x10] sm:$0xff] }
  0x27   :  { %172 = vrot.lane.b32.xlu0 %v161_v0, %s1939_s7  ;;  %165 = vrot.lane.b32.xlu1 %v161_v0, %s1940_s9  ;;  %s1941_s15 = smov 127   ;;  %s1942_s6 = smov 2   ;;  %v175_v7 = vld [vmem:[%s2322_s3] sm:$0xff]  ;;  %v176_v9 = vld [vmem:[%s2322_s3 + $0x8] sm:$0xff]  ;;  %vm449_vm10 = vcmask 588800   ;;  %vm644_vm15 = vcmask 326656  }
  0x28   :  { %v2033_v5 = vshrl.u32 %v155_v3, 7  ;;  %v178_v11 = vld [vmem:[%s2322_s3 + $0x18] sm:$0xff]  ;;  %v179_v12 = vld [vmem:[%s2322_s3 + $0x20] sm:$0xff]  ;;  %v180_v13 = vld [vmem:[%s2322_s3 + $0x28] sm:$0xff]  ;;  %s255_s29 = sld [smem:[#allocation3]]  ;;  %s1944_s16 = smov [#allocation17]  }
  0x29   :  { %v181_v14 = vld [vmem:[%s2322_s3 + $0x30] sm:$0xff]  ;;  %v182_v15 = vld [vmem:[%s2322_s3 + $0x38] sm:$0xff]  ;;  %v2071_v18 = vld [vmem:[#allocation7] ss:$0 sm:$0xff]  ;;  %s1409_s3 = sld [smem:[#allocation3 + $0x1]]  ;;  %s1381_s17 = sshll.u32 %s1944_s16, 4  ;;  %s1382_s17 = int_to_ptr.vmem [resolvable:$true] %s1381_s17 }
  0x2a   :  { %vm157_vm0 = vcmp.eq.s32.totalorder %v2033_v5, 0  ;;  %s1414_s2 = sld [smem:[#allocation3 + $0x3]]  ;;  %s1383_s8 = sshll.u32 %s2330_s11, 4  ;;  %s1384_s8 = int_to_ptr.hbm [resolvable:$true] %s1383_s8 }
  0x2b   :  { %s1417_s30 = sld [smem:[#allocation3 + $0x4]] }
  0x2c   :  { %s1422_s12 = sld [smem:[#allocation3 + $0x5]] }
  0x2d   :  { %s1431_s5 = sld [smem:[#allocation3 + $0x6]] }
  0x2e   :  { %v264_v16 = vstv %s255_s29 }
  0x2f   :  { %169 = vrot.lane.b32.xlu0 %v161_v0, %s1941_s15  ;;  %162 = vrot.lane.b32.xlu1 %v161_v0, %s1942_s6 }
  0x99   :  { %v173_v1 = vpop.permute.xlu0 %172  ;;  %v166_v2 = vpop.permute.xlu1 %165 }
  0x9a   :  { %224 = vmatpush.msra.mxu0 %v173_v1 }
  0xa1   :  { %v170_v4 = vpop.permute.xlu0 %169  ;;  %v163_v6 = vpop.permute.xlu1 %162 }
  0xa2   :  { %225 = vmatpush.msra.mxu0 %v170_v4 }
  0xa4   :  { %226 = vmatpush.msra.mxu0 %v161_v0 }
  0xa6   :  { %227 = vmatpush.msra.mxu0 %v166_v2 }
  0xa8   :  { %228 = vmatpush.msra.mxu0 %v163_v6 }
  0xaa   :  { %1433 = vmatpush.msk.msra.mxu0 %vm157_vm0, %v1943_v8 }
  0xab   :  { %1397 = vmatmul.msk.f32.vlgmr.msra.gmra.mxu0 %vm189_vm1, %v175_v7 }
  0xb3   :  { %1398 = vmatmul.msk.f32.gmra.mxu0 %vm189_vm1, %v176_v9 }
  0xbb   :  { %1399 = vmatmul.msk.f32.gmra.mxu0 %vm189_vm1, %v177_v10 }
  0xc3   :  { %1400 = vmatmul.msk.f32.gmra.mxu0 %vm189_vm1, %v178_v11 }
  0xcb   :  { %1401 = vmatmul.msk.f32.gmra.mxu0 %vm189_vm1, %v179_v12 }
  0xd3   :  { %1402 = vmatmul.msk.f32.gmra.mxu0 %vm189_vm1, %v180_v13 }
  0xdb   :  { %1403 = vmatmul.msk.f32.gmra.mxu0 %vm189_vm1, %v181_v14 }
  0xe3   :  { %1404 = vmatmul.msk.f32.gmra.mxu0 %vm189_vm1, %v182_v15 }
 0x128   :  { %v231_v17 = vpop.f32.mrf.mxu0 }
 0x129   :  { %vm256_vm2 = vcmp.ge.f32.partialorder %v231_v17, 0.0  ;;  %v265_v19 = vmul.f32 %v264_v16, %v231_v17 }
 0x12b   :  { %v273_v20 = vsel %vm256_vm2, %v231_v17, %v265_v19 }
 0x12c   :  { %v2074_v21 = vmul.f32 %v2071_v18, %v273_v20 }
 0x12e   :  { %348 = vrot.lane.b32.xlu0 %v2074_v21, %s1941_s15 }
 0x130   :  { %v234_v22 = vpop.f32.mrf.mxu0 }
 0x131   :  { %v266_v23 = vmul.f32 %v264_v16, %v234_v22  ;;  %vm257_vm3 = vcmp.ge.f32.partialorder %v234_v22, 0.0 }
 0x133   :  { %v274_v25 = vsel %vm257_vm3, %v234_v22, %v266_v23 }
 0x134   :  { %v2079_v28 = vmul.f32 %v2071_v18, %v274_v25 }
 0x136   :  { %v1519_v56 = vpack.i.bf16 %v2074_v21, %v2079_v28 }
 0x138   :  { %v237_v24 = vpop.f32.mrf.mxu0 }
 0x139   :  { %vm258_vm4 = vcmp.ge.f32.partialorder %v237_v24, 0.0  ;;  %v267_v26 = vmul.f32 %v264_v16, %v237_v24 }
 0x13b   :  { %v275_v27 = vsel %vm258_vm4, %v237_v24, %v267_v26  ;;  %vm745_vm4 = vcmask 719872  }
 0x13c   :  { %v2082_v29 = vmul.f32 %v2071_v18, %v275_v27 }
 0x13e   :  { %v1459_v30 = vpack.i.bf16 %v2079_v28, %v2082_v29 }
 0x140   :  { %1460 = vrot.lane.b32.xlu1 %v1459_v30, %s1941_s15  ;;  %v240_v31 = vpop.f32.mrf.mxu0 }
 0x141   :  { %v268_v32 = vmul.f32 %v264_v16, %v240_v31  ;;  %vm259_vm5 = vcmp.ge.f32.partialorder %v240_v31, 0.0 }
 0x143   :  { %v276_v34 = vsel %vm259_vm5, %v240_v31, %v268_v32 }
 0x144   :  { %v2089_v37 = vmul.f32 %v2071_v18, %v276_v34 }
 0x146   :  { %v1509_v55 = vpack.i.bf16 %v2082_v29, %v2089_v37 }
 0x148   :  { %1465 = vrot.lane.b32.xlu1 %v1459_v30, %s1940_s9  ;;  %v243_v33 = vpop.f32.mrf.mxu0 }
 0x149   :  { %vm260_vm6 = vcmp.ge.f32.partialorder %v243_v33, 0.0  ;;  %v269_v35 = vmul.f32 %v264_v16, %v243_v33 }
 0x14b   :  { %v277_v36 = vsel %vm260_vm6, %v243_v33, %v269_v35 }
 0x14c   :  { %v2092_v38 = vmul.f32 %v2071_v18, %v277_v36 }
 0x14e   :  { %v1469_v39 = vpack.i.bf16 %v2089_v37, %v2092_v38 }
 0x150   :  { %1470 = vrot.lane.b32.xlu2 %v1469_v39, %s1941_s15  ;;  %v246_v40 = vpop.f32.mrf.mxu0 }
 0x151   :  { %v270_v41 = vmul.f32 %v264_v16, %v246_v40  ;;  %vm261_vm7 = vcmp.ge.f32.partialorder %v246_v40, 0.0 }
 0x153   :  { %v278_v43 = vsel %vm261_vm7, %v246_v40, %v270_v41 }
 0x154   :  { %v289_v46 = vmul.f32 %v2071_v18, %v278_v43  ;;  %v396_v43 = vld [vmem:[%s2323_s4] sm:$0xff] }
 0x156   :  { %v1489_v53 = vpack.i.bf16 %v2092_v38, %v289_v46 }
 0x158   :  { %1475 = vrot.lane.b32.xlu2 %v1469_v39, %s1940_s9  ;;  %v249_v42 = vpop.f32.mrf.mxu0 }
 0x159   :  { %vm262_vm8 = vcmp.ge.f32.partialorder %v249_v42, 0.0  ;;  %v271_v44 = vmul.f32 %v264_v16, %v249_v42 }
 0x15b   :  { %v279_v45 = vsel %vm262_vm8, %v249_v42, %v271_v44  ;;  %v398_v42 = vld [vmem:[%s2323_s4 + $0x10] sm:$0xff] }
 0x15c   :  { %v290_v47 = vmul.f32 %v2071_v18, %v279_v45  ;;  %v400_v45 = vld [vmem:[%s2323_s4 + $0x20] sm:$0xff] }
 0x15e   :  { %v1484_v48 = vpack.i.bf16 %v289_v46, %v290_v47 }
 0x160   :  { %1485 = vrot.lane.b32.xlu0 %v1484_v48, %s1940_s9  ;;  %1480 = vrot.lane.b32.xlu2 %v1484_v48, %s1941_s15  ;;  %v252_v49 = vpop.f32.mrf.mxu0  ;;  %v403_v48 = vld [vmem:[%s2323_s4 + $0x38] sm:$0xff] }
 0x161   :  { %vm263_vm9 = vcmp.ge.f32.partialorder %v252_v49, 0.0  ;;  %v272_v50 = vmul.f32 %v264_v16, %v252_v49 }
 0x163   :  { %v280_v51 = vsel %vm263_vm9, %v252_v49, %v272_v50  ;;  %v404_v49 = vld [vmem:[%s2323_s4 + $0x40] sm:$0xff]  ;;  %v402_v50 = vld [vmem:[%s2323_s4 + $0x30] sm:$0xff] }
 0x164   :  { %v291_v52 = vmul.f32 %v2071_v18, %v280_v51  ;;  %v406_v51 = vld [vmem:[%s2323_s4 + $0x50] sm:$0xff] }
 0x166   :  { %v1504_v54 = vpack.i.bf16 %v290_v47, %v291_v52 }
 0x168   :  { %316 = vrot.lane.b32.xlu0 %v2074_v21, %s1940_s9  ;;  %1490 = vrot.lane.b32.xlu2 %v1489_v53, %s1939_s7 }
 0x169   :  { %1505 = vrot.lane.b32.xlu1 %v1504_v54, %s1942_s6 }
 0x170   :  { %1495 = vrot.lane.b32.xlu0 %v1489_v53, %s1942_s6  ;;  %1500 = vrot.lane.b32.xlu2 %v1504_v54, %s1939_s7  ;;  %v405_v53 = vld [vmem:[%s2323_s4 + $0x48] sm:$0xff] }
 0x171   :  { %1510 = vrot.lane.b32.xlu1 %v1509_v55, %s1939_s7 }
 0x178   :  { %1520 = vrot.lane.b32.xlu0 %v1519_v56, %s1939_s7  ;;  %1515 = vrot.lane.b32.xlu2 %v1509_v55, %s1942_s6 }
 0x179   :  { %330 = vrot.lane.b32.xlu1 %v291_v52, %s1940_s9 }
 0x180   :  { %362 = vrot.lane.b32.xlu0 %v291_v52, %s1941_s15  ;;  %1525 = vrot.lane.b32.xlu2 %v1519_v56, %s1942_s6 }
 0x1a0   :  { %v349_v4 = vpop.permute.xlu0 %348 }
 0x1aa   :  { %v1471_v57 = vpop.permute.xlu2 %1470 }
 0x1ab   :  { %v1472_v62 = vunpack.i.l.bf16 %v1471_v57  ;;  %v1473_v0 = vunpack.i.h.bf16 %v1471_v57 }
 0x1b2   :  { %v1476_v58 = vpop.permute.xlu2 %1475  ;;  %v1461_v63 = vpop.permute.xlu1 %1460 }
 0x1b3   :  { %v1462_v2 = vunpack.i.l.bf16 %v1461_v63  ;;  %v1463_v3 = vunpack.i.h.bf16 %v1461_v63  ;;  %v1477_v16 = vunpack.i.l.bf16 %v1476_v58  ;;  %v1478_v17 = vunpack.i.h.bf16 %v1476_v58 }
 0x1b4   :  { %v554_v58 = vstv %s1409_s3 }
 0x1ba   :  { %v1481_v59 = vpop.permute.xlu2 %1480  ;;  %v1466_v13 = vpop.permute.xlu1 %1465 }
 0x1bb   :  { %v1482_v60 = vunpack.i.l.bf16 %v1481_v59  ;;  %v1483_v61 = vunpack.i.h.bf16 %v1481_v59  ;;  %v1467_v22 = vunpack.i.l.bf16 %v1466_v13  ;;  %v1468_v23 = vunpack.i.h.bf16 %v1466_v13 }
 0x1bd   :  { %491 = vmatpush.msra.mxu2 %v1482_v60 }
 0x1bf   :  { %492 = vmatpush.msra.mxu2 %v1483_v61 }
 0x1c1   :  { %493 = vmatpush.msra.mxu2 %v1472_v62 }
 0x1c2   :  { %v1491_v1 = vpop.permute.xlu2 %1490 }
 0x1c3   :  { %494 = vmatpush.msra.mxu2 %v1473_v0  ;;  %v1492_v10 = vunpack.i.l.bf16 %v1491_v1  ;;  %v1493_v11 = vunpack.i.h.bf16 %v1491_v1 }
 0x1c5   :  { %495 = vmatpush.msra.mxu2 %v1462_v2 }
 0x1c7   :  { %496 = vmatpush.msra.mxu2 %v1463_v3 }
 0x1c9   :  { %497 = vmatpush.msra.mxu2 %v349_v4 }
 0x1ca   :  { %v1501_v6 = vpop.permute.xlu2 %1500 }
 0x1cb   :  { %498 = vmatpush.msra.mxu2 %v291_v52  ;;  %v1502_v7 = vunpack.i.l.bf16 %v1501_v6  ;;  %v1503_v9 = vunpack.i.h.bf16 %v1501_v6  ;;  %v407_v52 = vld [vmem:[%s2323_s4 + $0x58] sm:$0xff] }
 0x1cd   :  { %499 = vmatpush.msra.mxu2 %v290_v47  ;;  %527 = vmatpush.msra.mxu3 %v1502_v7  ;;  %v399_v47 = vld [vmem:[%s2323_s4 + $0x18] sm:$0xff] }
 0x1cf   :  { %500 = vmatpush.msra.mxu2 %v289_v46  ;;  %528 = vmatpush.msra.mxu3 %v1503_v9  ;;  %v401_v46 = vld [vmem:[%s2323_s4 + $0x28] sm:$0xff] }
 0x1d1   :  { %501 = vmatpush.msra.mxu2 %v2092_v38  ;;  %529 = vmatpush.msra.mxu3 %v1492_v10  ;;  %v397_v38 = vld [vmem:[%s2323_s4 + $0x8] sm:$0xff]  ;;  %s1412_s4 = sld [smem:[#allocation3 + $0x2]] }
 0x1d2   :  { %v1486_v12 = vpop.permute.xlu0 %1485  ;;  %v1516_v24 = vpop.permute.xlu2 %1515 }
 0x1d3   :  { %502 = vmatpush.msra.mxu2 %v2089_v37  ;;  %530 = vmatpush.msra.mxu3 %v1493_v11  ;;  %v1487_v14 = vunpack.i.l.bf16 %v1486_v12  ;;  %v1488_v15 = vunpack.i.h.bf16 %v1486_v12  ;;  %v1517_v32 = vunpack.i.l.bf16 %v1516_v24  ;;  %v1518_v36 = vunpack.i.h.bf16 %v1516_v24 }
 0x1d5   :  { %462 = vmatpush.msra.mxu1 %v1487_v14  ;;  %503 = vmatpush.msra.mxu2 %v2082_v29 }
 0x1d7   :  { %463 = vmatpush.msra.mxu1 %v1488_v15  ;;  %504 = vmatpush.msra.mxu2 %v2079_v28 }
 0x1d9   :  { %464 = vmatpush.msra.mxu1 %v1477_v16  ;;  %505 = vmatpush.msra.mxu2 %v2074_v21 }
 0x1da   :  { %v317_v19 = vpop.permute.xlu0 %316  ;;  %v1526_v33 = vpop.permute.xlu2 %1525 }
 0x1db   :  { %v1506_v20 = vpop.permute.xlu1 %1505  ;;  %465 = vmatpush.msra.mxu1 %v1478_v17  ;;  %v1527_v39 = vunpack.i.l.bf16 %v1526_v33  ;;  %v1528_v41 = vunpack.i.h.bf16 %v1526_v33 }
 0x1dc   :  { %v1507_v25 = vunpack.i.l.bf16 %v1506_v20  ;;  %v1508_v29 = vunpack.i.h.bf16 %v1506_v20 }
 0x1dd   :  { %466 = vmatpush.msra.mxu1 %v1467_v22 }
 0x1df   :  { %467 = vmatpush.msra.mxu1 %v1468_v23 }
 0x1e1   :  { %468 = vmatpush.msra.mxu1 %v317_v19 }
 0x1e2   :  { %v1496_v26 = vpop.permute.xlu0 %1495 }
 0x1e3   :  { %v1511_v27 = vpop.permute.xlu1 %1510  ;;  %469 = vmatpush.msra.mxu1 %v1507_v25  ;;  %v1497_v30 = vunpack.i.l.bf16 %v1496_v26  ;;  %v1498_v31 = vunpack.i.h.bf16 %v1496_v26 }
 0x1e4   :  { %v1512_v28 = vunpack.i.l.bf16 %v1511_v27  ;;  %v1513_v21 = vunpack.i.h.bf16 %v1511_v27 }
 0x1e5   :  { %470 = vmatpush.msra.mxu1 %v1508_v29 }
 0x1e6   :  { %531 = vmatpush.msra.mxu3 %v1512_v28 }
 0x1e7   :  { %471 = vmatpush.msra.mxu1 %v1497_v30 }
 0x1e8   :  { %532 = vmatpush.msra.mxu3 %v1513_v21 }
 0x1e9   :  { %472 = vmatpush.msra.mxu1 %v1498_v31 }
 0x1ea   :  { %v1521_v34 = vpop.permute.xlu0 %1520 }
 0x1eb   :  { %v331_v35 = vpop.permute.xlu1 %330  ;;  %473 = vmatpush.msra.mxu1 %v1517_v32  ;;  %v1522_v37 = vunpack.i.l.bf16 %v1521_v34  ;;  %v1523_v40 = vunpack.i.h.bf16 %v1521_v34 }
 0x1ec   :  { %506 = vmatpush.msra.mxu2 %v331_v35 }
 0x1ed   :  { %474 = vmatpush.msra.mxu1 %v1518_v36  ;;  %533 = vmatpush.msra.mxu3 %v1522_v37 }
 0x1ee   :  { %507 = vmatmul.f32.vlgmr.msra.gmra.mxu2 %v397_v38 }
 0x1ef   :  { %475 = vmatpush.msra.mxu1 %v1527_v39  ;;  %534 = vmatpush.msra.mxu3 %v1523_v40 }
 0x1f1   :  { %476 = vmatpush.msra.mxu1 %v1528_v41 }
 0x1f2   :  { %v363_v44 = vpop.permute.xlu0 %362 }
 0x1f3   :  { %535 = vmatpush.msra.mxu3 %v363_v44  ;;  %1434 = vmatpush.msk.msra.mxu1 %vm157_vm0, %v1943_v8 }
 0x1f4   :  { %1405 = vmatmul.msk.f32.vlgmr.msra.gmra.mxu3 %vm449_vm10, %v398_v42  ;;  %478 = vmatmul.f32.vlgmr.msra.gmra.mxu1 %v396_v43 }
 0x1f6   :  { %510 = vmatmul.f32.gmra.mxu2 %v400_v45 }
 0x1fc   :  { %1406 = vmatmul.msk.f32.gmra.mxu3 %vm449_vm10, %v401_v46  ;;  %481 = vmatmul.f32.gmra.mxu1 %v399_v47 }
 0x1fe   :  { %513 = vmatmul.f32.gmra.mxu2 %v403_v48 }
 0x204   :  { %1407 = vmatmul.msk.f32.gmra.mxu3 %vm449_vm10, %v404_v49  ;;  %484 = vmatmul.f32.gmra.mxu1 %v402_v50  ;;  %v620_v49 = vld [vmem:[#allocation10 + $0x8] sm:$0xff] }
 0x206   :  { %516 = vmatmul.f32.gmra.mxu2 %v406_v51 }
 0x20c   :  { %1408 = vmatmul.msk.f32.gmra.mxu3 %vm449_vm10, %v407_v52  ;;  %487 = vmatmul.f32.gmra.mxu1 %v405_v53  ;;  %v619_v53 = vld [vmem:[#allocation10] sm:$0xff] }
 0x271   :  { %v479_v54 = vpop.f32.mrf.mxu1  ;;  %v508_v55 = vpop.f32.mrf.mxu2 }
 0x272   :  { %v509_v56 = vadd.f32 %v508_v55, %v479_v54  ;;  %v622_v54 = vld [vmem:[#allocation10 + $0x18] sm:$0xff]  ;;  %v621_v55 = vld [vmem:[#allocation10 + $0x10] sm:$0xff] }
 0x277   :  { %v537_v57 = vpop.f32.mrf.mxu3 }
 0x278   :  { %v538_v59 = vadd.f32 %v537_v57, %v509_v56 }
 0x279   :  { %v482_v60 = vpop.f32.mrf.mxu1  ;;  %v511_v61 = vpop.f32.mrf.mxu2 }
 0x27a   :  { %vm550_vm11 = vcmp.ge.f32.partialorder %v538_v59, 0.0  ;;  %v555_v62 = vmul.f32 %v554_v58, %v538_v59  ;;  %v512_v1 = vadd.f32 %v511_v61, %v482_v60 }
 0x27c   :  { %v559_v63 = vsel %vm550_vm11, %v538_v59, %v555_v62  ;;  %v700_v59 = vstv %s1412_s4 }
 0x27d   :  { %v563_v0 = vmul.f32 %v2071_v18, %v559_v63 }
 0x27f   :  { %v540_v2 = vpop.f32.mrf.mxu3  ;;  %595 = vrot.lane.b32.xlu2 %v563_v0, %s1941_s15 }
 0x280   :  { %v541_v6 = vadd.f32 %v540_v2, %v512_v1 }
 0x281   :  { %v485_v3 = vpop.f32.mrf.mxu1  ;;  %v514_v4 = vpop.f32.mrf.mxu2 }
 0x282   :  { %v515_v7 = vadd.f32 %v514_v4, %v485_v3  ;;  %v556_v9 = vmul.f32 %v554_v58, %v541_v6  ;;  %vm551_vm12 = vcmp.ge.f32.partialorder %v541_v6, 0.0 }
 0x284   :  { %v560_v14 = vsel %vm551_vm12, %v541_v6, %v556_v9 }
 0x285   :  { %v564_v19 = vmul.f32 %v2071_v18, %v560_v14 }
 0x287   :  { %v543_v10 = vpop.f32.mrf.mxu3  ;;  %v1539_v28 = vpack.i.bf16 %v563_v0, %v564_v19 }
 0x288   :  { %v544_v11 = vadd.f32 %v543_v10, %v515_v7 }
 0x289   :  { %v488_v12 = vpop.f32.mrf.mxu1  ;;  %v517_v13 = vpop.f32.mrf.mxu2 }
 0x28a   :  { %vm552_vm13 = vcmp.ge.f32.partialorder %v544_v11, 0.0  ;;  %v557_v15 = vmul.f32 %v554_v58, %v544_v11  ;;  %v518_v17 = vadd.f32 %v517_v13, %v488_v12 }
 0x28c   :  { %v561_v16 = vsel %vm552_vm13, %v544_v11, %v557_v15 }
 0x28d   :  { %v565_v20 = vmul.f32 %v2071_v18, %v561_v16 }
 0x28f   :  { %v546_v22 = vpop.f32.mrf.mxu3  ;;  %v1529_v23 = vpack.i.bf16 %v564_v19, %v565_v20 }
 0x290   :  { %v547_v24 = vadd.f32 %v546_v22, %v518_v17  ;;  %v733_v22 = vld [vmem:[#allocation11] sm:$0xff] }
 0x291   :  { %1530 = vrot.lane.b32.xlu1 %v1529_v23, %s1941_s15  ;;  %v771_v23 = vstv %s1414_s2 }
 0x292   :  { %vm553_vm14 = vcmp.ge.f32.partialorder %v547_v24, 0.0  ;;  %v558_v25 = vmul.f32 %v554_v58, %v547_v24 }
 0x294   :  { %v562_v26 = vsel %vm553_vm14, %v547_v24, %v558_v25 }
 0x295   :  { %v566_v27 = vmul.f32 %v2071_v18, %v562_v26 }
 0x297   :  { %v1534_v29 = vpack.i.bf16 %v565_v20, %v566_v27 }
 0x299   :  { %1535 = vrot.lane.b32.xlu0 %v1534_v29, %s1940_s9  ;;  %1540 = vrot.lane.b32.xlu1 %v1539_v28, %s1940_s9 }
 0x29a   :  { %1545 = vrot.lane.b32.xlu2 %v1534_v29, %s1942_s6 }
 0x2a1   :  { %1550 = vrot.lane.b32.xlu0 %v1539_v28, %s1942_s6  ;;  %1555 = vrot.lane.b32.xlu1 %v1534_v29, %s1939_s7 }
 0x2a2   :  { %1560 = vrot.lane.b32.xlu2 %v1539_v28, %s1939_s7 }
 0x2a9   :  { %601 = vrot.lane.b32.xlu0 %v566_v27, %s1941_s15 }
 0x2d9   :  { %v596_v30 = vpop.permute.xlu2 %595 }
 0x2f4   :  { %v1546_v33 = vpop.permute.xlu2 %1545 }
 0x2f5   :  { %v1547_v46 = vunpack.i.l.bf16 %v1546_v33  ;;  %v1548_v48 = vunpack.i.h.bf16 %v1546_v33 }
 0x2fc   :  { %v1561_v41 = vpop.permute.xlu2 %1560 }
 0x2fd   :  { %v1562_v45 = vunpack.i.l.bf16 %v1561_v41  ;;  %v1563_v47 = vunpack.i.h.bf16 %v1561_v41 }
 0x303   :  { %v1531_v21 = vpop.permute.xlu1 %1530 }
 0x304   :  { %v1532_v31 = vunpack.i.l.bf16 %v1531_v21  ;;  %v1533_v32 = vunpack.i.h.bf16 %v1531_v21 }
 0x306   :  { %651 = vmatpush.msrb.mxu3 %v1532_v31  ;;  %v788_v31 = vld [vmem:[#allocation13] sm:$0xff] }
 0x308   :  { %652 = vmatpush.msrb.mxu3 %v1533_v32  ;;  %v789_v32 = vld [vmem:[#allocation13 + $0x8] sm:$0xff] }
 0x30a   :  { %653 = vmatpush.msrb.mxu3 %v596_v30 }
 0x30b   :  { %v1536_v34 = vpop.permute.xlu0 %1535  ;;  %v1541_v35 = vpop.permute.xlu1 %1540 }
 0x30c   :  { %654 = vmatpush.msrb.mxu3 %v566_v27  ;;  %v1537_v36 = vunpack.i.l.bf16 %v1536_v34  ;;  %v1538_v39 = vunpack.i.h.bf16 %v1536_v34  ;;  %v1542_v42 = vunpack.i.l.bf16 %v1541_v35  ;;  %v1543_v44 = vunpack.i.h.bf16 %v1541_v35 }
 0x30d   :  { %v828_v34 = vstv %s1417_s30 }
 0x30e   :  { %655 = vmatpush.msrb.mxu3 %v565_v20 }
 0x310   :  { %656 = vmatpush.msrb.mxu3 %v564_v19 }
 0x312   :  { %657 = vmatpush.msrb.mxu3 %v563_v0 }
 0x313   :  { %v1551_v37 = vpop.permute.xlu0 %1550  ;;  %v1556_v38 = vpop.permute.xlu1 %1555 }
 0x314   :  { %658 = vmatpush.msrb.mxu3 %v1537_v36  ;;  %v1557_v40 = vunpack.i.l.bf16 %v1556_v38  ;;  %v1558_v43 = vunpack.i.h.bf16 %v1556_v38  ;;  %v1552_v51 = vunpack.i.l.bf16 %v1551_v37  ;;  %v1553_v52 = vunpack.i.h.bf16 %v1551_v37 }
 0x316   :  { %659 = vmatpush.msrb.mxu3 %v1538_v39  ;;  %685 = vmatpush.msrb.mxu0 %v1557_v40 }
 0x318   :  { %660 = vmatpush.msrb.mxu3 %v1542_v42  ;;  %686 = vmatpush.msrb.mxu0 %v1558_v43 }
 0x31a   :  { %661 = vmatpush.msrb.mxu3 %v1543_v44  ;;  %687 = vmatpush.msrb.mxu0 %v1562_v45 }
 0x31b   :  { %v602_v50 = vpop.permute.xlu0 %601 }
 0x31c   :  { %662 = vmatpush.msrb.mxu3 %v1547_v46  ;;  %688 = vmatpush.msrb.mxu0 %v1563_v47 }
 0x31e   :  { %663 = vmatpush.msrb.mxu3 %v1548_v48  ;;  %689 = vmatpush.msrb.mxu0 %v602_v50 }
 0x31f   :  { %1410 = vmatmul.msk.f32.vlgmr.msrb.gmra.mxu0 %vm644_vm15, %v620_v49 }
 0x320   :  { %664 = vmatpush.msrb.mxu3 %v1552_v51 }
 0x322   :  { %665 = vmatpush.msrb.mxu3 %v1553_v52 }
 0x324   :  { %1435 = vmatpush.msk.msrb.mxu3 %vm157_vm0, %v1943_v8 }
 0x325   :  { %667 = vmatmul.f32.vlgmr.msrb.gmra.mxu3 %v619_v53 }
 0x327   :  { %1411 = vmatmul.msk.f32.gmra.mxu0 %vm644_vm15, %v622_v54 }
 0x32d   :  { %670 = vmatmul.f32.gmra.mxu3 %v621_v55  ;;  %v861_v55 = vld [vmem:[#allocation14] sm:$0xff] }
 0x39c   :  { %v691_v56 = vpop.f32.mrf.mxu0 }
 0x3a4   :  { %v694_v60 = vpop.f32.mrf.mxu0 }
 0x3a8   :  { %v668_v57 = vpop.f32.mrf.mxu3 }
 0x3a9   :  { %v692_v58 = vadd.f32 %v691_v56, %v668_v57  ;;  %v862_v56 = vld [vmem:[#allocation14 + $0x8] sm:$0xff]  ;;  %v863_v57 = vld [vmem:[#allocation14 + $0x10] sm:$0xff] }
 0x3ab   :  { %v701_v61 = vmul.f32 %v700_v59, %v692_v58  ;;  %vm698_vm2 = vcmp.ge.f32.partialorder %v692_v58, 0.0 }
 0x3ad   :  { %v703_v0 = vsel %vm698_vm2, %v692_v58, %v701_v61  ;;  %v864_v58 = vld [vmem:[#allocation14 + $0x18] sm:$0xff] }
 0x3ae   :  { %v705_v3 = vmul.f32 %v2071_v18, %v703_v0 }
 0x3b0   :  { %v671_v62 = vpop.f32.mrf.mxu3 }
 0x3b1   :  { %v695_v63 = vadd.f32 %v694_v60, %v671_v62 }
 0x3b3   :  { %vm699_vm3 = vcmp.ge.f32.partialorder %v695_v63, 0.0  ;;  %v702_v1 = vmul.f32 %v700_v59, %v695_v63  ;;  %v922_v59 = vstv %s1422_s12 }
 0x3b5   :  { %v704_v2 = vsel %vm699_vm3, %v695_v63, %v702_v1 }
 0x3b6   :  { %v706_v4 = vmul.f32 %v2071_v18, %v704_v2 }
 0x3b8   :  { %v1564_v6 = vpack.i.bf16 %v705_v3, %v706_v4 }
 0x3ba   :  { %1565 = vrot.lane.b32.xlu1 %v1564_v6, %s1939_s7  ;;  %1575 = vrot.lane.b32.xlu0 %v1564_v6, %s1940_s9 }
 0x3bb   :  { %1570 = vrot.lane.b32.xlu2 %v1564_v6, %s1941_s15 }
 0x3c2   :  { %1580 = vrot.lane.b32.xlu1 %v1564_v6, %s1942_s6 }
 0x415   :  { %v1571_v10 = vpop.permute.xlu2 %1570 }
 0x416   :  { %v1572_v12 = vunpack.i.l.bf16 %v1571_v10  ;;  %v1573_v13 = vunpack.i.h.bf16 %v1571_v10 }
 0x42c   :  { %v1566_v7 = vpop.permute.xlu1 %1565  ;;  %v1576_v14 = vpop.permute.xlu0 %1575 }
 0x42d   :  { %v1567_v9 = vunpack.i.l.bf16 %v1566_v7  ;;  %v1568_v11 = vunpack.i.h.bf16 %v1566_v7  ;;  %v1577_v15 = vunpack.i.l.bf16 %v1576_v14  ;;  %v1578_v17 = vunpack.i.h.bf16 %v1576_v14 }
 0x42f   :  { %754 = vmatpush.msrb.mxu2 %v1567_v9 }
 0x431   :  { %755 = vmatpush.msrb.mxu2 %v1568_v11 }
 0x433   :  { %756 = vmatpush.msrb.mxu2 %v1572_v12 }
 0x434   :  { %v1581_v16 = vpop.permute.xlu1 %1580 }
 0x435   :  { %757 = vmatpush.msrb.mxu2 %v1573_v13  ;;  %v1582_v19 = vunpack.i.l.bf16 %v1581_v16  ;;  %v1583_v20 = vunpack.i.h.bf16 %v1581_v16 }
 0x437   :  { %758 = vmatpush.msrb.mxu2 %v706_v4 }
 0x439   :  { %759 = vmatpush.msrb.mxu2 %v705_v3 }
 0x43b   :  { %760 = vmatpush.msrb.mxu2 %v1577_v15 }
 0x43d   :  { %761 = vmatpush.msrb.mxu2 %v1578_v17 }
 0x43f   :  { %762 = vmatpush.msrb.mxu2 %v1582_v19 }
 0x441   :  { %763 = vmatpush.msrb.mxu2 %v1583_v20 }
 0x443   :  { %1436 = vmatpush.msk.msrb.mxu2 %vm157_vm0, %v1943_v8 }
 0x444   :  { %1413 = vmatmul.msk.f32.vlgmr.msrb.gmra.mxu2 %vm745_vm4, %v733_v22 }
 0x4c7   :  { %v766_v24 = vpop.f32.mrf.mxu2 }
 0x4c8   :  { %vm770_vm5 = vcmp.ge.f32.partialorder %v766_v24, 0.0  ;;  %v772_v25 = vmul.f32 %v771_v23, %v766_v24 }
 0x4ca   :  { %v773_v26 = vsel %vm770_vm5, %v766_v24, %v772_v25 }
 0x4cb   :  { %v774_v27 = vmul.f32 %v2071_v18, %v773_v26 }
 0x4cd   :  { %782 = vrot.lane.b32.xlu0 %v774_v27, %s1941_s15  ;;  %778 = vrot.lane.b32.xlu1 %v774_v27, %s1940_s9 }
 0x4ce   :  { %785 = vrot.lane.b32.xlu2 %v774_v27, %s1939_s7 }
 0x4d6   :  { %775 = vrot.lane.b32.xlu2 %v774_v27, %s1942_s6 }
 0x528   :  { %v786_v29 = vpop.permute.xlu2 %785 }
 0x529   :  { %812 = vmatpush.msra.mxu3 %v786_v29 }
 0x530   :  { %v776_v21 = vpop.permute.xlu2 %775 }
 0x53f   :  { %v783_v28 = vpop.permute.xlu0 %782  ;;  %v779_v30 = vpop.permute.xlu1 %778 }
 0x540   :  { %813 = vmatpush.msra.mxu3 %v783_v28 }
 0x542   :  { %814 = vmatpush.msra.mxu3 %v774_v27 }
 0x544   :  { %815 = vmatpush.msra.mxu3 %v779_v30 }
 0x546   :  { %816 = vmatpush.msra.mxu3 %v776_v21 }
 0x548   :  { %1437 = vmatpush.msk.msra.mxu3 %vm157_vm0, %v1943_v8 }
 0x549   :  { %1415 = vmatmul.msk.f32.vlgmr.msra.gmra.mxu3 %vm189_vm1, %v788_v31 }
 0x551   :  { %1416 = vmatmul.msk.f32.gmra.mxu3 %vm189_vm1, %v789_v32 }
 0x5cc   :  { %v819_v33 = vpop.f32.mrf.mxu3 }
 0x5cd   :  { %v829_v35 = vmul.f32 %v828_v34, %v819_v33  ;;  %vm826_vm6 = vcmp.ge.f32.partialorder %v819_v33, 0.0 }
 0x5cf   :  { %v831_v37 = vsel %vm826_vm6, %v819_v33, %v829_v35 }
 0x5d0   :  { %v833_v40 = vmul.f32 %v2071_v18, %v831_v37 }
 0x5d4   :  { %v822_v36 = vpop.f32.mrf.mxu3 }
 0x5d5   :  { %vm827_vm7 = vcmp.ge.f32.partialorder %v822_v36, 0.0  ;;  %v830_v38 = vmul.f32 %v828_v34, %v822_v36  ;;  %v988_v34 = vld [vmem:[#allocation16 + $0x8] sm:$0xff] }
 0x5d7   :  { %v832_v39 = vsel %vm827_vm7, %v822_v36, %v830_v38 }
 0x5d8   :  { %v834_v41 = vmul.f32 %v2071_v18, %v832_v39 }
 0x5da   :  { %v1584_v42 = vpack.i.bf16 %v833_v40, %v834_v41 }
 0x5dc   :  { %1585 = vrot.lane.b32.xlu0 %v1584_v42, %s1939_s7  ;;  %1590 = vrot.lane.b32.xlu1 %v1584_v42, %s1941_s15 }
 0x5dd   :  { %1595 = vrot.lane.b32.xlu2 %v1584_v42, %s1940_s9 }
 0x5e4   :  { %1600 = vrot.lane.b32.xlu0 %v1584_v42, %s1942_s6  ;;  %v987_v42 = vld [vmem:[#allocation16] sm:$0xff] }
 0x637   :  { %v1596_v49 = vpop.permute.xlu2 %1595 }
 0x638   :  { %v1597_v50 = vunpack.i.l.bf16 %v1596_v49  ;;  %v1598_v52 = vunpack.i.h.bf16 %v1596_v49  ;;  %v998_v49 = vld [vmem:[#allocation16 + $0x58] sm:$0xff] }
 0x64e   :  { %v1586_v43 = vpop.permute.xlu0 %1585  ;;  %v1591_v45 = vpop.permute.xlu1 %1590 }
 0x64f   :  { %v1587_v44 = vunpack.i.l.bf16 %v1586_v43  ;;  %v1588_v46 = vunpack.i.h.bf16 %v1586_v43  ;;  %v1592_v47 = vunpack.i.l.bf16 %v1591_v45  ;;  %v1593_v48 = vunpack.i.h.bf16 %v1591_v45  ;;  %v992_v43 = vld [vmem:[#allocation16 + $0x28] sm:$0xff]  ;;  %v994_v45 = vld [vmem:[#allocation16 + $0x38] sm:$0xff] }
 0x651   :  { %893 = vmatpush.msra.mxu0 %v1587_v44  ;;  %v989_v44 = vld [vmem:[#allocation16 + $0x10] sm:$0xff] }
 0x653   :  { %894 = vmatpush.msra.mxu0 %v1588_v46  ;;  %v991_v46 = vld [vmem:[#allocation16 + $0x20] sm:$0xff] }
 0x655   :  { %895 = vmatpush.msra.mxu0 %v1592_v47  ;;  %v996_v47 = vld [vmem:[#allocation16 + $0x48] sm:$0xff] }
 0x656   :  { %v1601_v51 = vpop.permute.xlu0 %1600 }
 0x657   :  { %896 = vmatpush.msra.mxu0 %v1593_v48  ;;  %v1602_v53 = vunpack.i.l.bf16 %v1601_v51  ;;  %v1603_v54 = vunpack.i.h.bf16 %v1601_v51  ;;  %v993_v48 = vld [vmem:[#allocation16 + $0x30] sm:$0xff]  ;;  %v1000_v51 = vld [vmem:[#allocation16 + $0x68] sm:$0xff] }
 0x659   :  { %897 = vmatpush.msra.mxu0 %v834_v41  ;;  %v990_v41 = vld [vmem:[#allocation16 + $0x18] sm:$0xff] }
 0x65b   :  { %898 = vmatpush.msra.mxu0 %v833_v40 }
 0x65d   :  { %899 = vmatpush.msra.mxu0 %v1597_v50  ;;  %v995_v50 = vld [vmem:[#allocation16 + $0x40] sm:$0xff] }
 0x65f   :  { %900 = vmatpush.msra.mxu0 %v1598_v52  ;;  %v997_v52 = vld [vmem:[#allocation16 + $0x50] sm:$0xff] }
 0x661   :  { %901 = vmatpush.msra.mxu0 %v1602_v53  ;;  %v1002_v53 = vld [vmem:[#allocation16 + $0x78] sm:$0xff] }
 0x663   :  { %902 = vmatpush.msra.mxu0 %v1603_v54  ;;  %v999_v54 = vld [vmem:[#allocation16 + $0x60] sm:$0xff] }
 0x665   :  { %1438 = vmatpush.msk.msra.mxu0 %vm157_vm0, %v1943_v8 }
 0x666   :  { %1418 = vmatmul.msk.f32.vlgmr.msra.gmra.mxu0 %vm745_vm4, %v861_v55  ;;  %v1001_v55 = vld [vmem:[#allocation16 + $0x70] sm:$0xff] }
 0x66e   :  { %1419 = vmatmul.msk.f32.gmra.mxu0 %vm745_vm4, %v862_v56 }
 0x676   :  { %1420 = vmatmul.msk.f32.gmra.mxu0 %vm745_vm4, %v863_v57 }
 0x67e   :  { %1421 = vmatmul.msk.f32.gmra.mxu0 %vm745_vm4, %v864_v58 }
 0x6e3   :  { %v905_v60 = vpop.f32.mrf.mxu0 }
 0x6e4   :  { %vm918_vm1 = vcmp.ge.f32.partialorder %v905_v60, 0.0  ;;  %v923_v61 = vmul.f32 %v922_v59, %v905_v60 }
 0x6e6   :  { %v927_v62 = vsel %vm918_vm1, %v905_v60, %v923_v61 }
 0x6e7   :  { %v931_v63 = vmul.f32 %v2071_v18, %v927_v62  ;;  %v1139_v62 = vstv %s1431_s5 }
 0x6e9   :  { %963 = vrot.lane.b32.xlu2 %v931_v63, %s1941_s15 }
 0x6eb   :  { %v908_v0 = vpop.f32.mrf.mxu0 }
 0x6ec   :  { %vm919_vm8 = vcmp.ge.f32.partialorder %v908_v0, 0.0  ;;  %v924_v1 = vmul.f32 %v922_v59, %v908_v0 }
 0x6ee   :  { %v928_v2 = vsel %vm919_vm8, %v908_v0, %v924_v1 }
 0x6ef   :  { %v932_v3 = vmul.f32 %v2071_v18, %v928_v2 }
 0x6f1   :  { %v1609_v4 = vpack.i.bf16 %v931_v63, %v932_v3 }
 0x6f3   :  { %v911_v6 = vpop.f32.mrf.mxu0  ;;  %1610 = vrot.lane.b32.xlu2 %v1609_v4, %s1940_s9 }
 0x6f4   :  { %vm920_vm9 = vcmp.ge.f32.partialorder %v911_v6, 0.0  ;;  %v925_v7 = vmul.f32 %v922_v59, %v911_v6 }
 0x6f6   :  { %v929_v9 = vsel %vm920_vm9, %v911_v6, %v925_v7  ;;  %v1710_v7 = vld [vmem:[#allocation7] ss:$0 sm:$0xff] }
 0x6f7   :  { %v933_v10 = vmul.f32 %v2071_v18, %v929_v9 }
 0x6f9   :  { %v1604_v11 = vpack.i.bf16 %v932_v3, %v933_v10 }
 0x6fb   :  { %1605 = vrot.lane.b32.xlu1 %v1604_v11, %s1941_s15  ;;  %v914_v12 = vpop.f32.mrf.mxu0 }
 0x6fc   :  { %vm921_vm11 = vcmp.ge.f32.partialorder %v914_v12, 0.0  ;;  %v926_v13 = vmul.f32 %v922_v59, %v914_v12 }
 0x6fe   :  { %v930_v14 = vsel %vm921_vm11, %v914_v12, %v926_v13 }
 0x6ff   :  { %v934_v15 = vmul.f32 %v2071_v18, %v930_v14 }
 0x701   :  { %v1614_v16 = vpack.i.bf16 %v933_v10, %v934_v15  ;;  %969 = vrot.lane.b32.xlu2 %v934_v15, %s1941_s15 }
 0x703   :  { %1615 = vrot.lane.b32.xlu0 %v1614_v16, %s1940_s9  ;;  %1625 = vrot.lane.b32.xlu1 %v1614_v16, %s1939_s7 }
 0x70b   :  { %1620 = vrot.lane.b32.xlu0 %v1609_v4, %s1939_s7  ;;  %1630 = vrot.lane.b32.xlu1 %v1614_v16, %s1942_s6 }
 0x713   :  { %1635 = vrot.lane.b32.xlu0 %v1609_v4, %s1942_s6 }
 0x743   :  { %v964_v22 = vpop.permute.xlu2 %963 }
 0x74d   :  { %v1611_v26 = vpop.permute.xlu2 %1610 }
 0x74e   :  { %v1612_v31 = vunpack.i.l.bf16 %v1611_v26  ;;  %v1613_v33 = vunpack.i.h.bf16 %v1611_v26 }
 0x75b   :  { %v970_v35 = vpop.permute.xlu2 %969 }
 0x76d   :  { %v1606_v17 = vpop.permute.xlu1 %1605 }
 0x76e   :  { %v1607_v19 = vunpack.i.l.bf16 %v1606_v17  ;;  %v1608_v20 = vunpack.i.h.bf16 %v1606_v17 }
 0x770   :  { %1048 = vmatpush.msrb.mxu1 %v1607_v19 }
 0x772   :  { %1049 = vmatpush.msrb.mxu1 %v1608_v20 }
 0x774   :  { %1050 = vmatpush.msrb.mxu1 %v964_v22 }
 0x775   :  { %v1616_v18 = vpop.permute.xlu0 %1615  ;;  %v1626_v23 = vpop.permute.xlu1 %1625 }
 0x776   :  { %1051 = vmatpush.msrb.mxu1 %v934_v15  ;;  %v1627_v24 = vunpack.i.l.bf16 %v1626_v23  ;;  %v1628_v25 = vunpack.i.h.bf16 %v1626_v23  ;;  %v1617_v27 = vunpack.i.l.bf16 %v1616_v18  ;;  %v1618_v30 = vunpack.i.h.bf16 %v1616_v18 }
 0x778   :  { %1052 = vmatpush.msrb.mxu1 %v933_v10  ;;  %1100 = vmatpush.msra.mxu2 %v1627_v24 }
 0x77a   :  { %1053 = vmatpush.msrb.mxu1 %v932_v3  ;;  %1101 = vmatpush.msra.mxu2 %v1628_v25 }
 0x77c   :  { %1054 = vmatpush.msrb.mxu1 %v931_v63 }
 0x77d   :  { %v1621_v29 = vpop.permute.xlu0 %1620  ;;  %v1631_v32 = vpop.permute.xlu1 %1630 }
 0x77e   :  { %v1622_v28 = vunpack.i.l.bf16 %v1621_v29  ;;  %1055 = vmatpush.msrb.mxu1 %v1617_v27  ;;  %v1623_v21 = vunpack.i.h.bf16 %v1621_v29  ;;  %v1632_v36 = vunpack.i.l.bf16 %v1631_v32  ;;  %v1633_v38 = vunpack.i.h.bf16 %v1631_v32 }
 0x780   :  { %1056 = vmatpush.msrb.mxu1 %v1618_v30  ;;  %1102 = vmatpush.msra.mxu2 %v1622_v28 }
 0x782   :  { %1057 = vmatpush.msrb.mxu1 %v1612_v31  ;;  %1103 = vmatpush.msra.mxu2 %v1623_v21 }
 0x784   :  { %1058 = vmatpush.msrb.mxu1 %v1613_v33  ;;  %1104 = vmatpush.msra.mxu2 %v970_v35 }
 0x785   :  { %v1636_v37 = vpop.permute.xlu0 %1635  ;;  %1423 = vmatmul.msk.f32.vlgmr.msra.gmra.mxu2 %vm644_vm15, %v988_v34 }
 0x786   :  { %1059 = vmatpush.msrb.mxu1 %v1632_v36  ;;  %v1637_v39 = vunpack.i.l.bf16 %v1636_v37  ;;  %v1638_v40 = vunpack.i.h.bf16 %v1636_v37 }
 0x788   :  { %1060 = vmatpush.msrb.mxu1 %v1633_v38 }
 0x78a   :  { %1061 = vmatpush.msrb.mxu1 %v1637_v39 }
 0x78c   :  { %1062 = vmatpush.msrb.mxu1 %v1638_v40 }
 0x78d   :  { %1424 = vmatmul.msk.f32.gmra.mxu2 %vm644_vm15, %v990_v41 }
 0x78e   :  { %1439 = vmatpush.msk.msrb.mxu1 %vm157_vm0, %v1943_v8 }
 0x78f   :  { %1064 = vmatmul.f32.vlgmr.msrb.gmra.mxu1 %v987_v42 }
 0x795   :  { %1425 = vmatmul.msk.f32.gmra.mxu2 %vm644_vm15, %v992_v43 }
 0x797   :  { %1067 = vmatmul.f32.gmra.mxu1 %v989_v44 }
 0x79d   :  { %1426 = vmatmul.msk.f32.gmra.mxu2 %vm644_vm15, %v994_v45 }
 0x79f   :  { %1070 = vmatmul.f32.gmra.mxu1 %v991_v46 }
 0x7a5   :  { %1427 = vmatmul.msk.f32.gmra.mxu2 %vm644_vm15, %v996_v47 }
 0x7a7   :  { %1073 = vmatmul.f32.gmra.mxu1 %v993_v48 }
 0x7ad   :  { %1428 = vmatmul.msk.f32.gmra.mxu2 %vm644_vm15, %v998_v49 }
 0x7af   :  { %1076 = vmatmul.f32.gmra.mxu1 %v995_v50 }
 0x7b5   :  { %1429 = vmatmul.msk.f32.gmra.mxu2 %vm644_vm15, %v1000_v51 }
 0x7b7   :  { %1079 = vmatmul.f32.gmra.mxu1 %v997_v52 }
 0x7bd   :  { %1430 = vmatmul.msk.f32.gmra.mxu2 %vm644_vm15, %v1002_v53 }
 0x7bf   :  { %1082 = vmatmul.f32.gmra.mxu1 %v999_v54 }
 0x7c7   :  { %1085 = vmatmul.f32.gmra.mxu1 %v1001_v55 }
 0x808   :  { %v1106_v56 = vpop.f32.mrf.mxu2 }
 0x80c   :  { %v1065_v57 = vpop.f32.mrf.mxu1 }
 0x80d   :  { %v1107_v35 = vadd.f32 %v1106_v56, %v1065_v57 }
 0x80f   :  { %v1140_v41 = vmul.f32 %v1139_v62, %v1107_v35  ;;  %vm1131_vm4 = vcmp.ge.f32.partialorder %v1107_v35, 0.0 }
 0x810   :  { %v1109_v58 = vpop.f32.mrf.mxu2 }
 0x811   :  { %v1148_v44 = vsel %vm1131_vm4, %v1107_v35, %v1140_v41 }
 0x812   :  { %v2271_v47 = vmul.f32 %v1710_v7, %v1148_v44 }
 0x814   :  { %v1068_v59 = vpop.f32.mrf.mxu1 }
 0x815   :  { %v1110_v60 = vadd.f32 %v1109_v58, %v1068_v59 }
 0x817   :  { %v1141_v63 = vmul.f32 %v1139_v62, %v1110_v60  ;;  %vm1132_vm12 = vcmp.ge.f32.partialorder %v1110_v60, 0.0 }
 0x818   :  { %v1112_v61 = vpop.f32.mrf.mxu2 }
 0x819   :  { %v1149_v2 = vsel %vm1132_vm12, %v1110_v60, %v1141_v63 }
 0x81a   :  { %v2243_v9 = vmul.f32 %v1710_v7, %v1149_v2 }
 0x81c   :  { %v1071_v0 = vpop.f32.mrf.mxu1  ;;  %v1684_v50 = vpack.i.bf16 %v2271_v47, %v2243_v9 }
 0x81d   :  { %v1113_v1 = vadd.f32 %v1112_v61, %v1071_v0 }
 0x81f   :  { %vm1133_vm13 = vcmp.ge.f32.partialorder %v1113_v1, 0.0  ;;  %v1142_v3 = vmul.f32 %v1139_v62, %v1113_v1 }
 0x820   :  { %v1115_v4 = vpop.f32.mrf.mxu2 }
 0x821   :  { %v1150_v6 = vsel %vm1133_vm13, %v1113_v1, %v1142_v3 }
 0x822   :  { %v2245_v10 = vmul.f32 %v1710_v7, %v1150_v6 }
 0x824   :  { %v1074_v11 = vpop.f32.mrf.mxu1  ;;  %v1639_v12 = vpack.i.bf16 %v2243_v9, %v2245_v10 }
 0x825   :  { %v1116_v13 = vadd.f32 %v1115_v4, %v1074_v11 }
 0x826   :  { %1640 = vrot.lane.b32.xlu0 %v1639_v12, %s1940_s9 }
 0x827   :  { %v1143_v15 = vmul.f32 %v1139_v62, %v1116_v13  ;;  %vm1134_vm14 = vcmp.ge.f32.partialorder %v1116_v13, 0.0 }
 0x828   :  { %v1118_v14 = vpop.f32.mrf.mxu2 }
 0x829   :  { %v1151_v19 = vsel %vm1134_vm14, %v1116_v13, %v1143_v15 }
 0x82a   :  { %v2251_v23 = vmul.f32 %v1710_v7, %v1151_v19 }
 0x82c   :  { %v1077_v16 = vpop.f32.mrf.mxu1  ;;  %v1669_v49 = vpack.i.bf16 %v2245_v10, %v2251_v23 }
 0x82d   :  { %v1119_v17 = vadd.f32 %v1118_v14, %v1077_v16 }
 0x82e   :  { %1665 = vrot.lane.b32.xlu0 %v1639_v12, %s1941_s15 }
 0x82f   :  { %vm1135_vm15 = vcmp.ge.f32.partialorder %v1119_v17, 0.0  ;;  %v1144_v20 = vmul.f32 %v1139_v62, %v1119_v17 }
 0x830   :  { %v1121_v22 = vpop.f32.mrf.mxu2 }
 0x831   :  { %v1152_v18 = vsel %vm1135_vm15, %v1119_v17, %v1144_v20 }
 0x832   :  { %v2253_v24 = vmul.f32 %v1710_v7, %v1152_v18 }
 0x834   :  { %v1080_v25 = vpop.f32.mrf.mxu1  ;;  %v1644_v26 = vpack.i.bf16 %v2251_v23, %v2253_v24 }
 0x835   :  { %v1122_v27 = vadd.f32 %v1121_v22, %v1080_v25 }
 0x836   :  { %1645 = vrot.lane.b32.xlu2 %v1644_v26, %s1940_s9 }
 0x837   :  { %vm1136_vm2 = vcmp.ge.f32.partialorder %v1122_v27, 0.0  ;;  %v1145_v29 = vmul.f32 %v1139_v62, %v1122_v27 }
 0x838   :  { %v1124_v28 = vpop.f32.mrf.mxu2 }
 0x839   :  { %v1153_v30 = vsel %vm1136_vm2, %v1122_v27, %v1145_v29 }
 0x83a   :  { %v2258_v21 = vmul.f32 %v1710_v7, %v1153_v30 }
 0x83c   :  { %v1083_v31 = vpop.f32.mrf.mxu1  ;;  %v1659_v32 = vpack.i.bf16 %v2253_v24, %v2258_v21 }
 0x83d   :  { %v1125_v33 = vadd.f32 %v1124_v28, %v1083_v31  ;;  %v1268_v28 = vld [vmem:[%s2329_s10] sm:$0xff] }
 0x83e   :  { %1660 = vrot.lane.b32.xlu2 %v1659_v32, %s1942_s6 }
 0x83f   :  { %vm1137_vm3 = vcmp.ge.f32.partialorder %v1125_v33, 0.0  ;;  %v1146_v34 = vmul.f32 %v1139_v62, %v1125_v33 }
 0x840   :  { %v1127_v38 = vpop.f32.mrf.mxu2 }
 0x841   :  { %v1154_v36 = vsel %vm1137_vm3, %v1125_v33, %v1146_v34  ;;  %v1270_v34 = vld [vmem:[%s2329_s10 + $0x10] sm:$0xff] }
 0x842   :  { %v2263_v37 = vmul.f32 %v1710_v7, %v1154_v36 }
 0x844   :  { %v1086_v39 = vpop.f32.mrf.mxu1  ;;  %v1674_v40 = vpack.i.bf16 %v2258_v21, %v2263_v37 }
 0x845   :  { %v1128_v42 = vadd.f32 %v1127_v38, %v1086_v39 }
 0x846   :  { %1675 = vrot.lane.b32.xlu2 %v1674_v40, %s1941_s15  ;;  %1650 = vrot.lane.b32.xlu1 %v1674_v40, %s1940_s9 }
 0x847   :  { %vm1138_vm5 = vcmp.ge.f32.partialorder %v1128_v42, 0.0  ;;  %v1147_v43 = vmul.f32 %v1139_v62, %v1128_v42 }
 0x849   :  { %v1155_v45 = vsel %vm1138_vm5, %v1128_v42, %v1147_v43 }
 0x84a   :  { %v2269_v46 = vmul.f32 %v1710_v7, %v1155_v45 }
 0x84c   :  { %v1689_v48 = vpack.i.bf16 %v2263_v37, %v2269_v46 }
 0x84e   :  { %1188 = vrot.lane.b32.xlu1 %v2271_v47, %s1940_s9  ;;  %1690 = vrot.lane.b32.xlu2 %v1689_v48, %s1939_s7 }
 0x84f   :  { %1680 = vrot.lane.b32.xlu0 %v1689_v48, %s1942_s6 }
 0x856   :  { %1655 = vrot.lane.b32.xlu1 %v1644_v26, %s1941_s15  ;;  %1695 = vrot.lane.b32.xlu2 %v1659_v32, %s1939_s7 }
 0x857   :  { %1220 = vrot.lane.b32.xlu0 %v2271_v47, %s1941_s15 }
 0x85e   :  { %1670 = vrot.lane.b32.xlu1 %v1669_v49, %s1942_s6  ;;  %1234 = vrot.lane.b32.xlu2 %v2269_v46, %s1941_s15 }
 0x85f   :  { %1700 = vrot.lane.b32.xlu0 %v1669_v49, %s1939_s7 }
 0x866   :  { %1685 = vrot.lane.b32.xlu1 %v1684_v50, %s1942_s6 }
 0x867   :  { %1202 = vrot.lane.b32.xlu0 %v2269_v46, %s1940_s9 }
 0x86e   :  { %1705 = vrot.lane.b32.xlu1 %v1684_v50, %s1939_s7 }
 0x890   :  { %v1646_v51 = vpop.permute.xlu2 %1645 }
 0x891   :  { %v1647_v61 = vunpack.i.l.bf16 %v1646_v51  ;;  %v1648_v62 = vunpack.i.h.bf16 %v1646_v51 }
 0x898   :  { %v1661_v52 = vpop.permute.xlu2 %1660  ;;  %v1641_v56 = vpop.permute.xlu0 %1640 }
 0x899   :  { %v1642_v0 = vunpack.i.l.bf16 %v1641_v56  ;;  %v1643_v1 = vunpack.i.h.bf16 %v1641_v56  ;;  %v1662_v11 = vunpack.i.l.bf16 %v1661_v52  ;;  %v1663_v13 = vunpack.i.h.bf16 %v1661_v52 }
 0x8a0   :  { %v1676_v53 = vpop.permute.xlu2 %1675  ;;  %v1666_v60 = vpop.permute.xlu0 %1665 }
 0x8a1   :  { %v1677_v54 = vunpack.i.l.bf16 %v1676_v53  ;;  %v1678_v55 = vunpack.i.h.bf16 %v1676_v53  ;;  %v1667_v14 = vunpack.i.l.bf16 %v1666_v60  ;;  %v1668_v15 = vunpack.i.h.bf16 %v1666_v60 }
 0x8a3   :  { %1335 = vmatpush.msrb.mxu0 %v1677_v54 }
 0x8a5   :  { %1336 = vmatpush.msrb.mxu0 %v1678_v55 }
 0x8a8   :  { %v1691_v22 = vpop.permute.xlu2 %1690 }
 0x8a9   :  { %v1692_v29 = vunpack.i.l.bf16 %v1691_v22 }
 0x8b0   :  { %v1696_v30 = vpop.permute.xlu2 %1695 }
 0x8b1   :  { %v1698_v31 = vunpack.i.h.bf16 %v1696_v30 }
 0x8b8   :  { %v1651_v57 = vpop.permute.xlu1 %1650  ;;  %v1235_v35 = vpop.permute.xlu2 %1234 }
 0x8b9   :  { %v1652_v58 = vunpack.i.l.bf16 %v1651_v57  ;;  %v1653_v59 = vunpack.i.h.bf16 %v1651_v57 }
 0x8bb   :  { %1315 = vmatpush.msrb.mxu3 %v1652_v58 }
 0x8bd   :  { %1316 = vmatpush.msrb.mxu3 %v1653_v59 }
 0x8bf   :  { %1317 = vmatpush.msrb.mxu3 %v1647_v61 }
 0x8c0   :  { %v1189_v63 = vpop.permute.xlu1 %1188 }
 0x8c1   :  { %1318 = vmatpush.msrb.mxu3 %v1648_v62  ;;  %v1681_v2 = vpop.permute.xlu0 %1680 }
 0x8c2   :  { %v1682_v3 = vunpack.i.l.bf16 %v1681_v2  ;;  %v1683_v6 = vunpack.i.h.bf16 %v1681_v2 }
 0x8c3   :  { %1319 = vmatpush.msrb.mxu3 %v1642_v0 }
 0x8c5   :  { %1320 = vmatpush.msrb.mxu3 %v1643_v1 }
 0x8c7   :  { %1321 = vmatpush.msrb.mxu3 %v1189_v63 }
 0x8c8   :  { %v1656_v4 = vpop.permute.xlu1 %1655 }
 0x8c9   :  { %v1657_v7 = vunpack.i.l.bf16 %v1656_v4  ;;  %1322 = vmatpush.msrb.mxu3 %v1682_v3  ;;  %v1658_v12 = vunpack.i.h.bf16 %v1656_v4  ;;  %v1221_v16 = vpop.permute.xlu0 %1220 }
 0x8cb   :  { %1323 = vmatpush.msrb.mxu3 %v1683_v6  ;;  %1337 = vmatpush.msrb.mxu0 %v1657_v7 }
 0x8cd   :  { %1324 = vmatpush.msrb.mxu3 %v1662_v11  ;;  %1338 = vmatpush.msrb.mxu0 %v1658_v12 }
 0x8cf   :  { %1325 = vmatpush.msrb.mxu3 %v1663_v13  ;;  %1339 = vmatpush.msrb.mxu0 %v1667_v14 }
 0x8d0   :  { %v1671_v17 = vpop.permute.xlu1 %1670 }
 0x8d1   :  { %v1672_v19 = vunpack.i.l.bf16 %v1671_v17  ;;  %1340 = vmatpush.msrb.mxu0 %v1668_v15  ;;  %v1673_v20 = vunpack.i.h.bf16 %v1671_v17  ;;  %v1701_v26 = vpop.permute.xlu0 %1700 }
 0x8d2   :  { %v1702_v5 = vunpack.i.l.bf16 %v1701_v26 }
 0x8d3   :  { %1326 = vmatpush.msrb.mxu3 %v1672_v19  ;;  %1341 = vmatpush.msrb.mxu0 %v1221_v16 }
 0x8d5   :  { %1327 = vmatpush.msrb.mxu3 %v1673_v20  ;;  %1342 = vmatpush.msrb.mxu0 %v2269_v46 }
 0x8d7   :  { %1343 = vmatpush.msrb.mxu0 %v2263_v37 }
 0x8d8   :  { %v1686_v18 = vpop.permute.xlu1 %1685 }
 0x8d9   :  { %v1687_v25 = vunpack.i.l.bf16 %v1686_v18  ;;  %1344 = vmatpush.msrb.mxu0 %v2258_v21  ;;  %v1688_v27 = vunpack.i.h.bf16 %v1686_v18  ;;  %v1693_v21 = vunpack.i.h.bf16 %v1691_v22  ;;  %v1203_v32 = vpop.permute.xlu0 %1202 }
 0x8db   :  { %1328 = vmatpush.msrb.mxu3 %v1687_v25  ;;  %1345 = vmatpush.msrb.mxu0 %v2253_v24  ;;  %v1697_v24 = vunpack.i.l.bf16 %v1696_v30 }
 0x8dd   :  { %1329 = vmatpush.msrb.mxu3 %v1688_v27  ;;  %1346 = vmatpush.msrb.mxu0 %v2251_v23  ;;  %v1269_v23 = vld [vmem:[%s2329_s10 + $0x8] sm:$0xff] }
 0x8df   :  { %1440 = vmatpush.msk.msrb.mxu3 %vm157_vm0, %v1943_v8  ;;  %1347 = vmatpush.msrb.mxu0 %v2245_v10  ;;  %v1703_v10 = vunpack.i.h.bf16 %v1701_v26 }
 0x8e0   :  { %1331 = vmatmul.f32.vlgmr.msrb.gmra.mxu3 %v1268_v28  ;;  %v1706_v8 = vpop.permute.xlu1 %1705 }
 0x8e1   :  { %1362 = vmatpush.msra.mxu3 %v1692_v29  ;;  %1348 = vmatpush.msrb.mxu0 %v2243_v9  ;;  %v1707_v9 = vunpack.i.l.bf16 %v1706_v8  ;;  %v1708_v33 = vunpack.i.h.bf16 %v1706_v8 }
 0x8e3   :  { %1363 = vmatpush.msra.mxu3 %v1693_v21  ;;  %1349 = vmatpush.msrb.mxu0 %v2271_v47 }
 0x8e5   :  { %1364 = vmatpush.msra.mxu3 %v1697_v24  ;;  %1350 = vmatpush.msrb.mxu0 %v1203_v32 }
 0x8e6   :  { %1351 = vmatmul.f32.vlgmr.msrb.gmra.mxu0 %v1269_v23 }
 0x8e7   :  { %1365 = vmatpush.msra.mxu3 %v1698_v31 }
 0x8e9   :  { %1366 = vmatpush.msra.mxu3 %v1702_v5 }
 0x8eb   :  { %1367 = vmatpush.msra.mxu3 %v1703_v10 }
 0x8ed   :  { %1368 = vmatpush.msra.mxu3 %v1707_v9 }
 0x8ef   :  { %1369 = vmatpush.msra.mxu3 %v1708_v33 }
 0x8f1   :  { %1370 = vmatpush.msra.mxu3 %v1235_v35 }
 0x8f2   :  { %1432 = vmatmul.msk.f32.vlgmr.msra.gmra.mxu3 %vm449_vm10, %v1270_v34 }
 0x963   :  { %v1332_v36 = vpop.f32.mrf.mxu3  ;;  %v1352_v37 = vpop.f32.mrf.mxu0 }
 0x964   :  { %v1353_v38 = vadd.f32 %v1352_v37, %v1332_v36 }
 0x975   :  { %v1372_v39 = vpop.f32.mrf.mxu3 }
 0x976   :  { %v1373_v40 = vadd.f32 %v1372_v39, %v1353_v38 }
 0x978   :  { %1375 = vst [vmem:[#allocation17] sm:$0xff] %v1373_v40 }
 0x979   :  { %1386 = dma.vmem_to_hbm [thread:$0]  %s1382_s17, 128, %s1384_s8, [#allocation5]  }
 0x97a   :  { %1925 = dma.done.wait [#allocation5], 128  }
 0x97b   :  { %1926 = vsyncadd [#allocation5], 4294967168 }
 0x97c   :  { %1391 = vsyncpa [#allocation4], 1 }
 0x97d   :  { %1392 = vsyncpa [#allocation9], 1 }
 0x97e   :  { %1393 = vsyncpa [#allocation12], 1 }
 0x97f   :  { %1394 = vsyncpa [#allocation15], 1 }
 0x980   :  { %1395 = vsyncpa [#allocation5], 1 }
 0x981   :  { %1396 = vsyncpa [#allocation6], 1 }

</bundles_post_ra>
